<compile_context>
chip_gen: v5e
topology: v5e:2x2
jax: 0.10.0
libtpu: 0.0.40
codegen_flags: <defaults>
</compile_context>

<pallas_src>
import functools

import jax
import jax.numpy as jnp
from jax.experimental import pallas as pl
from jax.experimental.pallas import tpu as pltpu


def _round_up(x, m):
    return (x + m - 1) // m * m


def _vmem_limit_bytes():
    """~85% of physical VMEM, capped at 112 MiB (safe on v5e/v6e/v7x)."""
    try:
        cap = pltpu.get_tpu_info().vmem_capacity_bytes
        return int(min(int(cap * 0.85), 112 * 1024 * 1024))
    except Exception:
        return 48 * 1024 * 1024   # conservative: below v7x's 64 MiB physical


def _mhsa_kernel(x_ref,
                 w_q_ref, b_q_ref, w_k_ref, b_k_ref, w_v_ref, b_v_ref,
                 w_out_ref, b_out_ref, ln_w_ref, ln_b_ref,
                 o_ref,
                 k_cache, v_cache, attn_scratch,
                 *, num_heads, eps, seq_len, tile_q, matmul_dtype):
    # x_ref: (1, S_pad, E) full (padded) sequence block, resident across qi.
    H = num_heads
    S_pad, E = x_ref.shape[1], x_ref.shape[2]
    D = E // H
    scale = float(D) ** -0.5
    strict = jnp.dtype(matmul_dtype) == jnp.dtype(jnp.float32)

    def mm(a, w_ref):
        # Weights are pre-cast wrapper-side; only the activation is cast here.
        return jnp.dot(a.astype(matmul_dtype), w_ref[...],
                       preferred_element_type=jnp.float32)

    # ---- K/V projection: once per batch element, cached in persistent VMEM.
    @pl.when(pl.program_id(1) == 0)
    def _():
        x_all = x_ref[0]                                            # (S_pad, E)
        k_cache[...] = (mm(x_all, w_k_ref) + b_k_ref[...]).astype(k_cache.dtype)
        v_cache[...] = (mm(x_all, w_v_ref) + b_v_ref[...]).astype(v_cache.dtype)

    # ---- Query / residual tile sliced from the resident full-seq block.
    if tile_q == S_pad:
        x_q = x_ref[0]                                              # (TQ, E)
    else:
        q_start = pl.multiple_of(pl.program_id(1) * tile_q, tile_q)
        x_q = x_ref[0, pl.ds(q_start, tile_q), :]                   # (TQ, E)

    q = mm(x_q, w_q_ref) + b_q_ref[...]                             # (TQ, E) f32
    q = (q * scale).astype(matmul_dtype)       # fold 1/sqrt(D) into q (O(TQ*E))

    k = k_cache[...]                                                # (S_pad, E)
    v = v_cache[...]

    # ---- Per-head attention; each head's output lands directly in scratch.
    for h in range(H):
        qh = q[:, h * D:(h + 1) * D]                                # (TQ, D)
        kh = k[:, h * D:(h + 1) * D]                                # (S_pad, D)
        vh = v[:, h * D:(h + 1) * D]                                # (S_pad, D)
        # QK^T via dot_general contracting on D — no K transpose.
        scores = jax.lax.dot_general(
            qh, kh, (((1,), (1,)), ((), ())),
            preferred_element_type=jnp.float32)                     # (TQ, S_pad)
        if seq_len < S_pad:   # mask padded key columns (static branch)
            col = jax.lax.broadcasted_iota(jnp.int32, scores.shape, 1)
            scores = jnp.where(col < seq_len, scores, jnp.float32(-1e30))
        scores = scores - jnp.max(scores, axis=-1, keepdims=True)
        p = jnp.exp(scores)
        denom = jnp.sum(p, axis=-1, keepdims=True)
        if strict:
            p = p / denom                       # exact divide for parity mode
        else:
            p = p * pl.reciprocal(denom, approx=True)   # EUP slot, ~free
        attn_scratch[:, h * D:(h + 1) * D] = jnp.dot(
            p.astype(matmul_dtype), vh,
            preferred_element_type=jnp.float32).astype(attn_scratch.dtype)

    # ---- Output projection.
    attn_out = mm(attn_scratch[...], w_out_ref) + b_out_ref[...]    # (TQ, E) f32

    # ---- Residual + LayerNorm (f32, biased variance, PyTorch eps).
    y = x_q + attn_out
    mu = jnp.mean(y, axis=-1, keepdims=True)
    yc = y - mu
    var = jnp.mean(yc * yc, axis=-1, keepdims=True)
    out = yc * jax.lax.rsqrt(var + eps) * ln_w_ref[...] + ln_b_ref[...]

    o_ref[0] = out.astype(o_ref.dtype)


def multi_head_self_attention(x, params, *, num_heads, eps=1e-5,
                              matmul_dtype=jnp.bfloat16):
    """x: (B, S, E) float32. params: PyTorch-convention weights.

    matmul_dtype: MXU operand dtype (bf16 default for v6e/v7x throughput,
    float32 for strict numerical parity). Accumulation / softmax / LN are f32.
    """
    B, S, E = x.shape
    assert E % num_heads == 0, "emb_dim must be divisible by num_heads"

    # Query tiling: bounded 128-row tiles for long S (keeps the score slab and
    # pipelining independent of S); one sublane-padded tile for short S.
    if S > 128:
        S_pad = _round_up(S, 128)
        TQ = 128
    else:
        S_pad = _round_up(S, 8)
        TQ = S_pad
    num_q_tiles = S_pad // TQ

    if S_pad != S:
        x = jnp.pad(x, ((0, 0), (0, S_pad - S), (0, 0)))

    # Wrapper-side weight prep (trace-time, outside the kernel):
    #   - transpose so the kernel does x @ W (no in-kernel relayout)
    #   - split into separate q/k/v/out slabs (no (S,2E) column slices)
    #   - pre-cast weights to the MXU operand dtype; biases/LN stay f32 (1,E).
    w_in_t = params["in_proj_weight"].T.astype(matmul_dtype)        # (E, 3E)
    w_q_t = w_in_t[:, :E]
    w_k_t = w_in_t[:, E:2 * E]
    w_v_t = w_in_t[:, 2 * E:]
    b_in = params["in_proj_bias"].astype(jnp.float32)
    b_q = b_in[:E].reshape(1, E)
    b_k = b_in[E:2 * E].reshape(1, E)
    b_v = b_in[2 * E:].reshape(1, E)
    w_out_t = params["out_proj_weight"].T.astype(matmul_dtype)      # (E, E)
    b_out = params["out_proj_bias"].reshape(1, E).astype(jnp.float32)
    ln_w = params["ln_weight"].reshape(1, E).astype(jnp.float32)
    ln_b = params["ln_bias"].reshape(1, E).astype(jnp.float32)

    kernel = functools.partial(
        _mhsa_kernel, num_heads=num_heads, eps=eps, seq_len=S,
        tile_q=TQ, matmul_dtype=matmul_dtype)

    def build(single_buffer_params):
        if single_buffer_params:
            def const_spec(shape):
                return pl.BlockSpec(shape, lambda b, qi: (0, 0),
                                    pipeline_mode=pl.Buffered(1))
        else:
            def const_spec(shape):
                return pl.BlockSpec(shape, lambda b, qi: (0, 0))
        return pl.pallas_call(
            kernel,
            out_shape=jax.ShapeDtypeStruct((B, S_pad, E), x.dtype),
            grid=(B, num_q_tiles),
            in_specs=[
                # Single x input: full (padded) sequence, qi-invariant block
                # (fetched once per batch element, stays resident across qi).
                pl.BlockSpec((1, S_pad, E), lambda b, qi: (b, 0, 0)),
                const_spec((E, E)), const_spec((1, E)),   # q-proj W^T, bias
                const_spec((E, E)), const_spec((1, E)),   # k-proj W^T, bias
                const_spec((E, E)), const_spec((1, E)),   # v-proj W^T, bias
                const_spec((E, E)), const_spec((1, E)),   # out-proj W^T, bias
                const_spec((1, E)), const_spec((1, E)),   # LN weight, bias
            ],
            out_specs=pl.BlockSpec((1, TQ, E), lambda b, qi: (b, qi, 0)),
            scratch_shapes=[
                pltpu.VMEM((S_pad, E), matmul_dtype),     # K cache (per batch)
                pltpu.VMEM((S_pad, E), matmul_dtype),     # V cache (per batch)
                pltpu.VMEM((TQ, E), matmul_dtype),        # per-head attn output
            ],
            compiler_params=pltpu.CompilerParams(
                # qi must be "arbitrary": the K/V cache is written at qi == 0
                # and reused by the remaining query tiles on the same core.
                dimension_semantics=("parallel", "arbitrary"),
                vmem_limit_bytes=_vmem_limit_bytes()),
        )

    args = (x, w_q_t, b_q, w_k_t, b_k, w_v_t, b_v, w_out_t, b_out, ln_w, ln_b)
    try:
        out = build(True)(*args)
    except Exception:
        # pipeline_mode=pl.Buffered(1) not supported by this JAX/Mosaic build:
        # fall back to default double-buffered weight blocks.
        out = build(False)(*args)

    if S_pad != S:
        out = out[:, :S, :]
    return out


def _reference(x, params, num_heads, eps=1e-5):
    """Pure-JAX reference of the same forward (eval mode)."""
    B, S, E = x.shape
    D = E // num_heads
    qkv = jnp.einsum("bse,fe->bsf", x, params["in_proj_weight"]) + params["in_proj_bias"]
    q, k, v = jnp.split(qkv, 3, axis=-1)

    def split_heads(t):  # (B, S, E) -> (B, H, S, D)
        return t.reshape(B, S, num_heads, D).transpose(0, 2, 1, 3)

    qh, kh, vh = split_heads(q), split_heads(k), split_heads(v)
    scores = jnp.einsum("bhqd,bhkd->bhqk", qh, kh) / jnp.sqrt(jnp.float32(D))
    p = jax.nn.softmax(scores, axis=-1)
    o = jnp.einsum("bhqk,bhkd->bhqd", p, vh).transpose(0, 2, 1, 3).reshape(B, S, E)
    o = jnp.einsum("bse,fe->bsf", o, params["out_proj_weight"]) + params["out_proj_bias"]
    y = x + o
    mu = jnp.mean(y, axis=-1, keepdims=True)
    var = jnp.mean((y - mu) ** 2, axis=-1, keepdims=True)
    return (y - mu) / jnp.sqrt(var + eps) * params["ln_weight"] + params["ln_bias"]


if __name__ == "__main__":
    B, S, E, H = 2, 8, 32, 4

    key = jax.random.PRNGKey(0)
    keys = jax.random.split(key, 6)
    scale = 1.0 / jnp.sqrt(jnp.float32(E))
    params = {
        "in_proj_weight": jax.random.uniform(keys[0], (3 * E, E), jnp.float32, -scale, scale),
        "in_proj_bias":   jax.random.uniform(keys[1], (3 * E,),   jnp.float32, -scale, scale),
        "out_proj_weight": jax.random.uniform(keys[2], (E, E),    jnp.float32, -scale, scale),
        "out_proj_bias":  jnp.zeros((E,), jnp.float32),
        "ln_weight":      jnp.ones((E,), jnp.float32),
        "ln_bias":        jnp.zeros((E,), jnp.float32),
    }
    x = jax.random.normal(keys[5], (B, S, E), jnp.float32)

    ref = _reference(x, params, H)

    # Strict-parity run: f32 MXU operands, exact softmax divide.
    out_f32 = jax.block_until_ready(
        multi_head_self_attention(x, params, num_heads=H, matmul_dtype=jnp.float32))
    assert out_f32.shape == (B, S, E)
    assert jnp.allclose(out_f32, ref, atol=2e-3, rtol=2e-3), \
        f"f32 max abs err {jnp.max(jnp.abs(out_f32 - ref))}"

    # Default fast path: bf16 MXU operands / bf16 K,V caches, f32 accumulation.
    out_bf16 = jax.block_until_ready(
        multi_head_self_attention(x, params, num_heads=H))
    assert out_bf16.shape == (B, S, E)
    assert jnp.allclose(out_bf16, ref, atol=5e-2, rtol=5e-2), \
        f"bf16 max abs err {jnp.max(jnp.abs(out_bf16 - ref))}"

    print("KERNEL_OK")
</pallas_src>

<mosaic_0001>
module attributes {stable_mosaic.version = 11 : i64} {
  func.func @_mhsa_kernel(%arg0: i32, %arg1: i32, %arg2: memref<1x8x32xf32, #tpu.memory_space<vmem>>, %arg3: memref<32x32xf32, #tpu.memory_space<vmem>>, %arg4: memref<1x32xf32, #tpu.memory_space<vmem>>, %arg5: memref<32x32xf32, #tpu.memory_space<vmem>>, %arg6: memref<1x32xf32, #tpu.memory_space<vmem>>, %arg7: memref<32x32xf32, #tpu.memory_space<vmem>>, %arg8: memref<1x32xf32, #tpu.memory_space<vmem>>, %arg9: memref<32x32xf32, #tpu.memory_space<vmem>>, %arg10: memref<1x32xf32, #tpu.memory_space<vmem>>, %arg11: memref<1x32xf32, #tpu.memory_space<vmem>>, %arg12: memref<1x32xf32, #tpu.memory_space<vmem>>, %arg13: memref<1x8x32xf32, #tpu.memory_space<vmem>>, %arg14: memref<8x32xf32, #tpu.memory_space<vmem>>, %arg15: memref<8x32xf32, #tpu.memory_space<vmem>>, %arg16: memref<8x32xf32, #tpu.memory_space<vmem>>) attributes {dimension_semantics = [#tpu.dimension_semantics<parallel>, #tpu.dimension_semantics<arbitrary>], iteration_bounds = array<i64: 2, 1>, scalar_prefetch = 0 : i64, scratch_operands = 3 : i64, tpu.core_type = #tpu.core_type<tc>, window_params = [{transform_indices = @transform_0, window_bounds = array<i64: 1, 8, 32>}, {pipeline_mode = #tpu.pipeline_mode<synchronous>, transform_indices = @transform_1, window_bounds = array<i64: 32, 32>}, {pipeline_mode = #tpu.pipeline_mode<synchronous>, transform_indices = @transform_2, window_bounds = array<i64: 1, 32>}, {pipeline_mode = #tpu.pipeline_mode<synchronous>, transform_indices = @transform_3, window_bounds = array<i64: 32, 32>}, {pipeline_mode = #tpu.pipeline_mode<synchronous>, transform_indices = @transform_4, window_bounds = array<i64: 1, 32>}, {pipeline_mode = #tpu.pipeline_mode<synchronous>, transform_indices = @transform_5, window_bounds = array<i64: 32, 32>}, {pipeline_mode = #tpu.pipeline_mode<synchronous>, transform_indices = @transform_6, window_bounds = array<i64: 1, 32>}, {pipeline_mode = #tpu.pipeline_mode<synchronous>, transform_indices = @transform_7, window_bounds = array<i64: 32, 32>}, {pipeline_mode = #tpu.pipeline_mode<synchronous>, transform_indices = @transform_8, window_bounds = array<i64: 1, 32>}, {pipeline_mode = #tpu.pipeline_mode<synchronous>, transform_indices = @transform_9, window_bounds = array<i64: 1, 32>}, {pipeline_mode = #tpu.pipeline_mode<synchronous>, transform_indices = @transform_10, window_bounds = array<i64: 1, 32>}, {transform_indices = @transform_11, window_bounds = array<i64: 1, 8, 32>}]} {
    %c0_i32 = arith.constant 0 : i32
    %0 = arith.cmpi eq, %arg1, %c0_i32 : i32
    %1 = arith.extui %0 : i1 to i32
    %c0_i32_0 = arith.constant 0 : i32
    %2 = arith.cmpi ne, %1, %c0_i32_0 : i32
    scf.if %2 {
      %c0_52 = arith.constant 0 : index
      %c0_53 = arith.constant 0 : index
      %c0_54 = arith.constant 0 : index
      %106 = vector.load %arg2[%c0_52, %c0_53, %c0_54] : memref<1x8x32xf32, #tpu.memory_space<vmem>>, vector<1x8x32xf32>
      %107 = vector.shape_cast %106 : vector<1x8x32xf32> to vector<8x32xf32>
      %c0_55 = arith.constant 0 : index
      %c0_56 = arith.constant 0 : index
      %108 = vector.load %arg5[%c0_55, %c0_56] : memref<32x32xf32, #tpu.memory_space<vmem>>, vector<32x32xf32>
      %cst_57 = arith.constant dense<0.000000e+00> : vector<8x32xf32>
      %109 = tpu.matmul %107, %108, %cst_57 {dimension_numbers = #tpu.dot_dimension_numbers<[1], [0], [0], [1], [0, 0, 1, 1], [], []>} : vector<8x32xf32>, vector<32x32xf32>, vector<8x32xf32> -> vector<8x32xf32>
      %c0_58 = arith.constant 0 : index
      %c0_59 = arith.constant 0 : index
      %110 = vector.load %arg6[%c0_58, %c0_59] : memref<1x32xf32, #tpu.memory_space<vmem>>, vector<1x32xf32>
      %111 = vector.broadcast %110 : vector<1x32xf32> to vector<8x32xf32>
      %112 = arith.addf %109, %111 : vector<8x32xf32>
      %c0_60 = arith.constant 0 : index
      %c0_61 = arith.constant 0 : index
      %113 = vector.load %arg14[%c0_60, %c0_61] : memref<8x32xf32, #tpu.memory_space<vmem>>, vector<8x32xf32>
      tpu.vector_store %arg14[%c0_60, %c0_61], %112 {strides = array<i32>} : memref<8x32xf32, #tpu.memory_space<vmem>>, vector<8x32xf32>,
      %c0_62 = arith.constant 0 : index
      %c0_63 = arith.constant 0 : index
      %114 = vector.load %arg7[%c0_62, %c0_63] : memref<32x32xf32, #tpu.memory_space<vmem>>, vector<32x32xf32>
      %cst_64 = arith.constant dense<0.000000e+00> : vector<8x32xf32>
      %115 = tpu.matmul %107, %114, %cst_64 {dimension_numbers = #tpu.dot_dimension_numbers<[1], [0], [0], [1], [0, 0, 1, 1], [], []>} : vector<8x32xf32>, vector<32x32xf32>, vector<8x32xf32> -> vector<8x32xf32>
      %c0_65 = arith.constant 0 : index
      %c0_66 = arith.constant 0 : index
      %116 = vector.load %arg8[%c0_65, %c0_66] : memref<1x32xf32, #tpu.memory_space<vmem>>, vector<1x32xf32>
      %117 = vector.broadcast %116 : vector<1x32xf32> to vector<8x32xf32>
      %118 = arith.addf %115, %117 : vector<8x32xf32>
      %c0_67 = arith.constant 0 : index
      %c0_68 = arith.constant 0 : index
      %119 = vector.load %arg15[%c0_67, %c0_68] : memref<8x32xf32, #tpu.memory_space<vmem>>, vector<8x32xf32>
      tpu.vector_store %arg15[%c0_67, %c0_68], %118 {strides = array<i32>} : memref<8x32xf32, #tpu.memory_space<vmem>>, vector<8x32xf32>,
    } else {
    }
    %c0 = arith.constant 0 : index
    %c0_1 = arith.constant 0 : index
    %c0_2 = arith.constant 0 : index
    %3 = vector.load %arg2[%c0, %c0_1, %c0_2] : memref<1x8x32xf32, #tpu.memory_space<vmem>>, vector<1x8x32xf32>
    %4 = vector.shape_cast %3 : vector<1x8x32xf32> to vector<8x32xf32>
    %c0_3 = arith.constant 0 : index
    %c0_4 = arith.constant 0 : index
    %5 = vector.load %arg3[%c0_3, %c0_4] : memref<32x32xf32, #tpu.memory_space<vmem>>, vector<32x32xf32>
    %cst = arith.constant dense<0.000000e+00> : vector<8x32xf32>
    %6 = tpu.matmul %4, %5, %cst {dimension_numbers = #tpu.dot_dimension_numbers<[1], [0], [0], [1], [0, 0, 1, 1], [], []>} : vector<8x32xf32>, vector<32x32xf32>, vector<8x32xf32> -> vector<8x32xf32>
    %c0_5 = arith.constant 0 : index
    %c0_6 = arith.constant 0 : index
    %7 = vector.load %arg4[%c0_5, %c0_6] : memref<1x32xf32, #tpu.memory_space<vmem>>, vector<1x32xf32>
    %8 = vector.broadcast %7 : vector<1x32xf32> to vector<8x32xf32>
    %9 = arith.addf %6, %8 : vector<8x32xf32>
    %cst_7 = arith.constant 0.353553385 : f32
    %10 = vector.broadcast %cst_7 : f32 to vector<8x32xf32>
    %11 = arith.mulf %9, %10 : vector<8x32xf32>
    %c0_8 = arith.constant 0 : index
    %c0_9 = arith.constant 0 : index
    %12 = vector.load %arg14[%c0_8, %c0_9] : memref<8x32xf32, #tpu.memory_space<vmem>>, vector<8x32xf32>
    %c0_10 = arith.constant 0 : index
    %c0_11 = arith.constant 0 : index
    %13 = vector.load %arg15[%c0_10, %c0_11] : memref<8x32xf32, #tpu.memory_space<vmem>>, vector<8x32xf32>
    %14 = vector.extract_strided_slice %11 {offsets = [0, 0], sizes = [8, 8], strides = [1, 1]} : vector<8x32xf32> to vector<8x8xf32>
    %15 = vector.extract_strided_slice %12 {offsets = [0, 0], sizes = [8, 8], strides = [1, 1]} : vector<8x32xf32> to vector<8x8xf32>
    %16 = vector.extract_strided_slice %13 {offsets = [0, 0], sizes = [8, 8], strides = [1, 1]} : vector<8x32xf32> to vector<8x8xf32>
    %cst_12 = arith.constant dense<0.000000e+00> : vector<8x8xf32>
    %17 = tpu.matmul %14, %15, %cst_12 {dimension_numbers = #tpu.dot_dimension_numbers<[1], [1], [0], [0], [0, 0, 1, 0], [], []>} : vector<8x8xf32>, vector<8x8xf32>, vector<8x8xf32> -> vector<8x8xf32>
    %cst_13 = arith.constant dense<0xFF800000> : vector<8xf32>
    %18 = vector.multi_reduction <maximumf>, %17, %cst_13 [1] : vector<8x8xf32> to vector<8xf32>
    %19 = vector.shape_cast %18 : vector<8xf32> to vector<8x1xf32>
    %20 = vector.broadcast %19 : vector<8x1xf32> to vector<8x8xf32>
    %21 = arith.subf %17, %20 : vector<8x8xf32>
    %22 = math.exp %21 : vector<8x8xf32>
    %cst_14 = arith.constant dense<0.000000e+00> : vector<8xf32>
    %23 = vector.multi_reduction <add>, %22, %cst_14 [1] : vector<8x8xf32> to vector<8xf32>
    %24 = vector.shape_cast %23 : vector<8xf32> to vector<8x1xf32>
    %25 = vector.broadcast %24 : vector<8x1xf32> to vector<8x8xf32>
    %26 = arith.divf %22, %25 : vector<8x8xf32>
    %cst_15 = arith.constant dense<0.000000e+00> : vector<8x8xf32>
    %27 = tpu.matmul %26, %16, %cst_15 {dimension_numbers = #tpu.dot_dimension_numbers<[1], [0], [0], [1], [0, 0, 1, 1], [], []>} : vector<8x8xf32>, vector<8x8xf32>, vector<8x8xf32> -> vector<8x8xf32>
    %c0_16 = arith.constant 0 : index
    %c0_17 = arith.constant 0 : index
    %28 = vector.load %arg16[%c0_16, %c0_17] : memref<8x32xf32, #tpu.memory_space<vmem>>, vector<8x8xf32>
    tpu.vector_store %arg16[%c0_16, %c0_17], %27 {strides = array<i32>} : memref<8x32xf32, #tpu.memory_space<vmem>>, vector<8x8xf32>,
    %29 = vector.extract_strided_slice %11 {offsets = [0, 8], sizes = [8, 8], strides = [1, 1]} : vector<8x32xf32> to vector<8x8xf32>
    %30 = vector.extract_strided_slice %12 {offsets = [0, 8], sizes = [8, 8], strides = [1, 1]} : vector<8x32xf32> to vector<8x8xf32>
    %31 = vector.extract_strided_slice %13 {offsets = [0, 8], sizes = [8, 8], strides = [1, 1]} : vector<8x32xf32> to vector<8x8xf32>
    %cst_18 = arith.constant dense<0.000000e+00> : vector<8x8xf32>
    %32 = tpu.matmul %29, %30, %cst_18 {dimension_numbers = #tpu.dot_dimension_numbers<[1], [1], [0], [0], [0, 0, 1, 0], [], []>} : vector<8x8xf32>, vector<8x8xf32>, vector<8x8xf32> -> vector<8x8xf32>
    %cst_19 = arith.constant dense<0xFF800000> : vector<8xf32>
    %33 = vector.multi_reduction <maximumf>, %32, %cst_19 [1] : vector<8x8xf32> to vector<8xf32>
    %34 = vector.shape_cast %33 : vector<8xf32> to vector<8x1xf32>
    %35 = vector.broadcast %34 : vector<8x1xf32> to vector<8x8xf32>
    %36 = arith.subf %32, %35 : vector<8x8xf32>
    %37 = math.exp %36 : vector<8x8xf32>
    %cst_20 = arith.constant dense<0.000000e+00> : vector<8xf32>
    %38 = vector.multi_reduction <add>, %37, %cst_20 [1] : vector<8x8xf32> to vector<8xf32>
    %39 = vector.shape_cast %38 : vector<8xf32> to vector<8x1xf32>
    %40 = vector.broadcast %39 : vector<8x1xf32> to vector<8x8xf32>
    %41 = arith.divf %37, %40 : vector<8x8xf32>
    %cst_21 = arith.constant dense<0.000000e+00> : vector<8x8xf32>
    %42 = tpu.matmul %41, %31, %cst_21 {dimension_numbers = #tpu.dot_dimension_numbers<[1], [0], [0], [1], [0, 0, 1, 1], [], []>} : vector<8x8xf32>, vector<8x8xf32>, vector<8x8xf32> -> vector<8x8xf32>
    %c0_22 = arith.constant 0 : index
    %c8 = arith.constant 8 : index
    %43 = vector.load %arg16[%c0_22, %c8] : memref<8x32xf32, #tpu.memory_space<vmem>>, vector<8x8xf32>
    tpu.vector_store %arg16[%c0_22, %c8], %42 {strides = array<i32>} : memref<8x32xf32, #tpu.memory_space<vmem>>, vector<8x8xf32>,
    %44 = vector.extract_strided_slice %11 {offsets = [0, 16], sizes = [8, 8], strides = [1, 1]} : vector<8x32xf32> to vector<8x8xf32>
    %45 = vector.extract_strided_slice %12 {offsets = [0, 16], sizes = [8, 8], strides = [1, 1]} : vector<8x32xf32> to vector<8x8xf32>
    %46 = vector.extract_strided_slice %13 {offsets = [0, 16], sizes = [8, 8], strides = [1, 1]} : vector<8x32xf32> to vector<8x8xf32>
    %cst_23 = arith.constant dense<0.000000e+00> : vector<8x8xf32>
    %47 = tpu.matmul %44, %45, %cst_23 {dimension_numbers = #tpu.dot_dimension_numbers<[1], [1], [0], [0], [0, 0, 1, 0], [], []>} : vector<8x8xf32>, vector<8x8xf32>, vector<8x8xf32> -> vector<8x8xf32>
    %cst_24 = arith.constant dense<0xFF800000> : vector<8xf32>
    %48 = vector.multi_reduction <maximumf>, %47, %cst_24 [1] : vector<8x8xf32> to vector<8xf32>
    %49 = vector.shape_cast %48 : vector<8xf32> to vector<8x1xf32>
    %50 = vector.broadcast %49 : vector<8x1xf32> to vector<8x8xf32>
    %51 = arith.subf %47, %50 : vector<8x8xf32>
    %52 = math.exp %51 : vector<8x8xf32>
    %cst_25 = arith.constant dense<0.000000e+00> : vector<8xf32>
    %53 = vector.multi_reduction <add>, %52, %cst_25 [1] : vector<8x8xf32> to vector<8xf32>
    %54 = vector.shape_cast %53 : vector<8xf32> to vector<8x1xf32>
    %55 = vector.broadcast %54 : vector<8x1xf32> to vector<8x8xf32>
    %56 = arith.divf %52, %55 : vector<8x8xf32>
    %cst_26 = arith.constant dense<0.000000e+00> : vector<8x8xf32>
    %57 = tpu.matmul %56, %46, %cst_26 {dimension_numbers = #tpu.dot_dimension_numbers<[1], [0], [0], [1], [0, 0, 1, 1], [], []>} : vector<8x8xf32>, vector<8x8xf32>, vector<8x8xf32> -> vector<8x8xf32>
    %c0_27 = arith.constant 0 : index
    %c16 = arith.constant 16 : index
    %58 = vector.load %arg16[%c0_27, %c16] : memref<8x32xf32, #tpu.memory_space<vmem>>, vector<8x8xf32>
    tpu.vector_store %arg16[%c0_27, %c16], %57 {strides = array<i32>} : memref<8x32xf32, #tpu.memory_space<vmem>>, vector<8x8xf32>,
    %59 = vector.extract_strided_slice %11 {offsets = [0, 24], sizes = [8, 8], strides = [1, 1]} : vector<8x32xf32> to vector<8x8xf32>
    %60 = vector.extract_strided_slice %12 {offsets = [0, 24], sizes = [8, 8], strides = [1, 1]} : vector<8x32xf32> to vector<8x8xf32>
    %61 = vector.extract_strided_slice %13 {offsets = [0, 24], sizes = [8, 8], strides = [1, 1]} : vector<8x32xf32> to vector<8x8xf32>
    %cst_28 = arith.constant dense<0.000000e+00> : vector<8x8xf32>
    %62 = tpu.matmul %59, %60, %cst_28 {dimension_numbers = #tpu.dot_dimension_numbers<[1], [1], [0], [0], [0, 0, 1, 0], [], []>} : vector<8x8xf32>, vector<8x8xf32>, vector<8x8xf32> -> vector<8x8xf32>
    %cst_29 = arith.constant dense<0xFF800000> : vector<8xf32>
    %63 = vector.multi_reduction <maximumf>, %62, %cst_29 [1] : vector<8x8xf32> to vector<8xf32>
    %64 = vector.shape_cast %63 : vector<8xf32> to vector<8x1xf32>
    %65 = vector.broadcast %64 : vector<8x1xf32> to vector<8x8xf32>
    %66 = arith.subf %62, %65 : vector<8x8xf32>
    %67 = math.exp %66 : vector<8x8xf32>
    %cst_30 = arith.constant dense<0.000000e+00> : vector<8xf32>
    %68 = vector.multi_reduction <add>, %67, %cst_30 [1] : vector<8x8xf32> to vector<8xf32>
    %69 = vector.shape_cast %68 : vector<8xf32> to vector<8x1xf32>
    %70 = vector.broadcast %69 : vector<8x1xf32> to vector<8x8xf32>
    %71 = arith.divf %67, %70 : vector<8x8xf32>
    %cst_31 = arith.constant dense<0.000000e+00> : vector<8x8xf32>
    %72 = tpu.matmul %71, %61, %cst_31 {dimension_numbers = #tpu.dot_dimension_numbers<[1], [0], [0], [1], [0, 0, 1, 1], [], []>} : vector<8x8xf32>, vector<8x8xf32>, vector<8x8xf32> -> vector<8x8xf32>
    %c0_32 = arith.constant 0 : index
    %c24 = arith.constant 24 : index
    %73 = vector.load %arg16[%c0_32, %c24] : memref<8x32xf32, #tpu.memory_space<vmem>>, vector<8x8xf32>
    tpu.vector_store %arg16[%c0_32, %c24], %72 {strides = array<i32>} : memref<8x32xf32, #tpu.memory_space<vmem>>, vector<8x8xf32>,
    %c0_33 = arith.constant 0 : index
    %c0_34 = arith.constant 0 : index
    %74 = vector.load %arg16[%c0_33, %c0_34] : memref<8x32xf32, #tpu.memory_space<vmem>>, vector<8x32xf32>
    %c0_35 = arith.constant 0 : index
    %c0_36 = arith.constant 0 : index
    %75 = vector.load %arg9[%c0_35, %c0_36] : memref<32x32xf32, #tpu.memory_space<vmem>>, vector<32x32xf32>
    %cst_37 = arith.constant dense<0.000000e+00> : vector<8x32xf32>
    %76 = tpu.matmul %74, %75, %cst_37 {dimension_numbers = #tpu.dot_dimension_numbers<[1], [0], [0], [1], [0, 0, 1, 1], [], []>} : vector<8x32xf32>, vector<32x32xf32>, vector<8x32xf32> -> vector<8x32xf32>
    %c0_38 = arith.constant 0 : index
    %c0_39 = arith.constant 0 : index
    %77 = vector.load %arg10[%c0_38, %c0_39] : memref<1x32xf32, #tpu.memory_space<vmem>>, vector<1x32xf32>
    %78 = vector.broadcast %77 : vector<1x32xf32> to vector<8x32xf32>
    %79 = arith.addf %76, %78 : vector<8x32xf32>
    %80 = arith.addf %4, %79 : vector<8x32xf32>
    %cst_40 = arith.constant dense<0.000000e+00> : vector<8xf32>
    %81 = vector.multi_reduction <add>, %80, %cst_40 [1] : vector<8x32xf32> to vector<8xf32>
    %82 = vector.shape_cast %81 : vector<8xf32> to vector<8x1xf32>
    %cst_41 = arith.constant 3.200000e+01 : f32
    %83 = vector.broadcast %cst_41 : f32 to vector<8x1xf32>
    %84 = arith.divf %82, %83 : vector<8x1xf32>
    %85 = vector.broadcast %84 : vector<8x1xf32> to vector<8x32xf32>
    %86 = arith.subf %80, %85 : vector<8x32xf32>
    %87 = arith.mulf %86, %86 : vector<8x32xf32>
    %cst_42 = arith.constant dense<0.000000e+00> : vector<8xf32>
    %88 = vector.multi_reduction <add>, %87, %cst_42 [1] : vector<8x32xf32> to vector<8xf32>
    %89 = vector.shape_cast %88 : vector<8xf32> to vector<8x1xf32>
    %cst_43 = arith.constant 3.200000e+01 : f32
    %90 = vector.broadcast %cst_43 : f32 to vector<8x1xf32>
    %91 = arith.divf %89, %90 : vector<8x1xf32>
    %cst_44 = arith.constant 9.99999974E-6 : f32
    %92 = vector.broadcast %cst_44 : f32 to vector<8x1xf32>
    %93 = arith.addf %91, %92 : vector<8x1xf32>
    %94 = math.rsqrt %93 : vector<8x1xf32>
    %95 = vector.broadcast %94 : vector<8x1xf32> to vector<8x32xf32>
    %96 = arith.mulf %86, %95 : vector<8x32xf32>
    %c0_45 = arith.constant 0 : index
    %c0_46 = arith.constant 0 : index
    %97 = vector.load %arg11[%c0_45, %c0_46] : memref<1x32xf32, #tpu.memory_space<vmem>>, vector<1x32xf32>
    %98 = vector.broadcast %97 : vector<1x32xf32> to vector<8x32xf32>
    %99 = arith.mulf %96, %98 : vector<8x32xf32>
    %c0_47 = arith.constant 0 : index
    %c0_48 = arith.constant 0 : index
    %100 = vector.load %arg12[%c0_47, %c0_48] : memref<1x32xf32, #tpu.memory_space<vmem>>, vector<1x32xf32>
    %101 = vector.broadcast %100 : vector<1x32xf32> to vector<8x32xf32>
    %102 = arith.addf %99, %101 : vector<8x32xf32>
    %c0_49 = arith.constant 0 : index
    %c0_50 = arith.constant 0 : index
    %c0_51 = arith.constant 0 : index
    %103 = vector.load %arg13[%c0_49, %c0_50, %c0_51] : memref<1x8x32xf32, #tpu.memory_space<vmem>>, vector<1x8x32xf32>
    %104 = vector.shape_cast %103 : vector<1x8x32xf32> to vector<8x32xf32>
    %105 = vector.shape_cast %102 : vector<8x32xf32> to vector<1x8x32xf32>
    tpu.vector_store %arg13[%c0_49, %c0_50, %c0_51], %105 {strides = array<i32>} : memref<1x8x32xf32, #tpu.memory_space<vmem>>, vector<1x8x32xf32>,
    return
  }
  func.func @transform_0(%arg0: i32, %arg1: i32) -> (i32, i32, i32) {
    %c0_i32 = arith.constant 0 : i32
    %c0_i32_0 = arith.constant 0 : i32
    %c0_i32_1 = arith.constant 0 : i32
    return %arg0, %c0_i32, %c0_i32_0 : i32, i32, i32
  }
  func.func @transform_1(%arg0: i32, %arg1: i32) -> (i32, i32) {
    %c0_i32 = arith.constant 0 : i32
    %c0_i32_0 = arith.constant 0 : i32
    %c0_i32_1 = arith.constant 0 : i32
    return %c0_i32, %c0_i32_0 : i32, i32
  }
  func.func @transform_2(%arg0: i32, %arg1: i32) -> (i32, i32) {
    %c0_i32 = arith.constant 0 : i32
    %c0_i32_0 = arith.constant 0 : i32
    %c0_i32_1 = arith.constant 0 : i32
    return %c0_i32, %c0_i32_0 : i32, i32
  }
  func.func @transform_3(%arg0: i32, %arg1: i32) -> (i32, i32) {
    %c0_i32 = arith.constant 0 : i32
    %c0_i32_0 = arith.constant 0 : i32
    %c0_i32_1 = arith.constant 0 : i32
    return %c0_i32, %c0_i32_0 : i32, i32
  }
  func.func @transform_4(%arg0: i32, %arg1: i32) -> (i32, i32) {
    %c0_i32 = arith.constant 0 : i32
    %c0_i32_0 = arith.constant 0 : i32
    %c0_i32_1 = arith.constant 0 : i32
    return %c0_i32, %c0_i32_0 : i32, i32
  }
  func.func @transform_5(%arg0: i32, %arg1: i32) -> (i32, i32) {
    %c0_i32 = arith.constant 0 : i32
    %c0_i32_0 = arith.constant 0 : i32
    %c0_i32_1 = arith.constant 0 : i32
    return %c0_i32, %c0_i32_0 : i32, i32
  }
  func.func @transform_6(%arg0: i32, %arg1: i32) -> (i32, i32) {
    %c0_i32 = arith.constant 0 : i32
    %c0_i32_0 = arith.constant 0 : i32
    %c0_i32_1 = arith.constant 0 : i32
    return %c0_i32, %c0_i32_0 : i32, i32
  }
  func.func @transform_7(%arg0: i32, %arg1: i32) -> (i32, i32) {
    %c0_i32 = arith.constant 0 : i32
    %c0_i32_0 = arith.constant 0 : i32
    %c0_i32_1 = arith.constant 0 : i32
    return %c0_i32, %c0_i32_0 : i32, i32
  }
  func.func @transform_8(%arg0: i32, %arg1: i32) -> (i32, i32) {
    %c0_i32 = arith.constant 0 : i32
    %c0_i32_0 = arith.constant 0 : i32
    %c0_i32_1 = arith.constant 0 : i32
    return %c0_i32, %c0_i32_0 : i32, i32
  }
  func.func @transform_9(%arg0: i32, %arg1: i32) -> (i32, i32) {
    %c0_i32 = arith.constant 0 : i32
    %c0_i32_0 = arith.constant 0 : i32
    %c0_i32_1 = arith.constant 0 : i32
    return %c0_i32, %c0_i32_0 : i32, i32
  }
  func.func @transform_10(%arg0: i32, %arg1: i32) -> (i32, i32) {
    %c0_i32 = arith.constant 0 : i32
    %c0_i32_0 = arith.constant 0 : i32
    %c0_i32_1 = arith.constant 0 : i32
    return %c0_i32, %c0_i32_0 : i32, i32
  }
  func.func @transform_11(%arg0: i32, %arg1: i32) -> (i32, i32, i32) {
    %c0_i32 = arith.constant 0 : i32
    %c0_i32_0 = arith.constant 0 : i32
    return %arg0, %arg1, %c0_i32 : i32, i32, i32
  }
}

module attributes {stable_mosaic.version = 11 : i64} {
  func.func @_mhsa_kernel(%arg0: i32, %arg1: i32, %arg2: memref<1x8x32xf32, #tpu.memory_space<vmem>>, %arg3: memref<32x32xf32, #tpu.memory_space<vmem>>, %arg4: memref<1x32xf32, #tpu.memory_space<vmem>>, %arg5: memref<32x32xf32, #tpu.memory_space<vmem>>, %arg6: memref<1x32xf32, #tpu.memory_space<vmem>>, %arg7: memref<32x32xf32, #tpu.memory_space<vmem>>, %arg8: memref<1x32xf32, #tpu.memory_space<vmem>>, %arg9: memref<32x32xf32, #tpu.memory_space<vmem>>, %arg10: memref<1x32xf32, #tpu.memory_space<vmem>>, %arg11: memref<1x32xf32, #tpu.memory_space<vmem>>, %arg12: memref<1x32xf32, #tpu.memory_space<vmem>>, %arg13: memref<1x8x32xf32, #tpu.memory_space<vmem>>, %arg14: memref<8x32xf32, #tpu.memory_space<vmem>>, %arg15: memref<8x32xf32, #tpu.memory_space<vmem>>, %arg16: memref<8x32xf32, #tpu.memory_space<vmem>>) attributes {dimension_semantics = [#tpu.dimension_semantics<parallel>, #tpu.dimension_semantics<arbitrary>], iteration_bounds = array<i64: 2, 1>, scalar_prefetch = 0 : i64, scratch_operands = 3 : i64, tpu.core_type = #tpu.core_type<tc>, window_params = [{transform_indices = @transform_0, window_bounds = array<i64: 1, 8, 32>}, {pipeline_mode = #tpu.pipeline_mode<synchronous>, transform_indices = @transform_1, window_bounds = array<i64: 32, 32>}, {pipeline_mode = #tpu.pipeline_mode<synchronous>, transform_indices = @transform_2, window_bounds = array<i64: 1, 32>}, {pipeline_mode = #tpu.pipeline_mode<synchronous>, transform_indices = @transform_3, window_bounds = array<i64: 32, 32>}, {pipeline_mode = #tpu.pipeline_mode<synchronous>, transform_indices = @transform_4, window_bounds = array<i64: 1, 32>}, {pipeline_mode = #tpu.pipeline_mode<synchronous>, transform_indices = @transform_5, window_bounds = array<i64: 32, 32>}, {pipeline_mode = #tpu.pipeline_mode<synchronous>, transform_indices = @transform_6, window_bounds = array<i64: 1, 32>}, {pipeline_mode = #tpu.pipeline_mode<synchronous>, transform_indices = @transform_7, window_bounds = array<i64: 32, 32>}, {pipeline_mode = #tpu.pipeline_mode<synchronous>, transform_indices = @transform_8, window_bounds = array<i64: 1, 32>}, {pipeline_mode = #tpu.pipeline_mode<synchronous>, transform_indices = @transform_9, window_bounds = array<i64: 1, 32>}, {pipeline_mode = #tpu.pipeline_mode<synchronous>, transform_indices = @transform_10, window_bounds = array<i64: 1, 32>}, {transform_indices = @transform_11, window_bounds = array<i64: 1, 8, 32>}]} {
    %c0_i32 = arith.constant 0 : i32
    %0 = arith.cmpi eq, %arg1, %c0_i32 : i32
    %1 = arith.extui %0 : i1 to i32
    %c0_i32_0 = arith.constant 0 : i32
    %2 = arith.cmpi ne, %1, %c0_i32_0 : i32
    scf.if %2 {
      %c0_52 = arith.constant 0 : index
      %c0_53 = arith.constant 0 : index
      %c0_54 = arith.constant 0 : index
      %106 = vector.load %arg2[%c0_52, %c0_53, %c0_54] : memref<1x8x32xf32, #tpu.memory_space<vmem>>, vector<1x8x32xf32>
      %107 = vector.shape_cast %106 : vector<1x8x32xf32> to vector<8x32xf32>
      %c0_55 = arith.constant 0 : index
      %c0_56 = arith.constant 0 : index
      %108 = vector.load %arg5[%c0_55, %c0_56] : memref<32x32xf32, #tpu.memory_space<vmem>>, vector<32x32xf32>
      %cst_57 = arith.constant dense<0.000000e+00> : vector<8x32xf32>
      %109 = tpu.matmul %107, %108, %cst_57 {dimension_numbers = #tpu.dot_dimension_numbers<[1], [0], [0], [1], [0, 0, 1, 1], [], []>} : vector<8x32xf32>, vector<32x32xf32>, vector<8x32xf32> -> vector<8x32xf32>
      %c0_58 = arith.constant 0 : index
      %c0_59 = arith.constant 0 : index
      %110 = vector.load %arg6[%c0_58, %c0_59] : memref<1x32xf32, #tpu.memory_space<vmem>>, vector<1x32xf32>
      %111 = vector.broadcast %110 : vector<1x32xf32> to vector<8x32xf32>
      %112 = arith.addf %109, %111 : vector<8x32xf32>
      %c0_60 = arith.constant 0 : index
      %c0_61 = arith.constant 0 : index
      %113 = vector.load %arg14[%c0_60, %c0_61] : memref<8x32xf32, #tpu.memory_space<vmem>>, vector<8x32xf32>
      tpu.vector_store %arg14[%c0_60, %c0_61], %112 {strides = array<i32>} : memref<8x32xf32, #tpu.memory_space<vmem>>, vector<8x32xf32>,
      %c0_62 = arith.constant 0 : index
      %c0_63 = arith.constant 0 : index
      %114 = vector.load %arg7[%c0_62, %c0_63] : memref<32x32xf32, #tpu.memory_space<vmem>>, vector<32x32xf32>
      %cst_64 = arith.constant dense<0.000000e+00> : vector<8x32xf32>
      %115 = tpu.matmul %107, %114, %cst_64 {dimension_numbers = #tpu.dot_dimension_numbers<[1], [0], [0], [1], [0, 0, 1, 1], [], []>} : vector<8x32xf32>, vector<32x32xf32>, vector<8x32xf32> -> vector<8x32xf32>
      %c0_65 = arith.constant 0 : index
      %c0_66 = arith.constant 0 : index
      %116 = vector.load %arg8[%c0_65, %c0_66] : memref<1x32xf32, #tpu.memory_space<vmem>>, vector<1x32xf32>
      %117 = vector.broadcast %116 : vector<1x32xf32> to vector<8x32xf32>
      %118 = arith.addf %115, %117 : vector<8x32xf32>
      %c0_67 = arith.constant 0 : index
      %c0_68 = arith.constant 0 : index
      %119 = vector.load %arg15[%c0_67, %c0_68] : memref<8x32xf32, #tpu.memory_space<vmem>>, vector<8x32xf32>
      tpu.vector_store %arg15[%c0_67, %c0_68], %118 {strides = array<i32>} : memref<8x32xf32, #tpu.memory_space<vmem>>, vector<8x32xf32>,
    } else {
    }
    %c0 = arith.constant 0 : index
    %c0_1 = arith.constant 0 : index
    %c0_2 = arith.constant 0 : index
    %3 = vector.load %arg2[%c0, %c0_1, %c0_2] : memref<1x8x32xf32, #tpu.memory_space<vmem>>, vector<1x8x32xf32>
    %4 = vector.shape_cast %3 : vector<1x8x32xf32> to vector<8x32xf32>
    %c0_3 = arith.constant 0 : index
    %c0_4 = arith.constant 0 : index
    %5 = vector.load %arg3[%c0_3, %c0_4] : memref<32x32xf32, #tpu.memory_space<vmem>>, vector<32x32xf32>
    %cst = arith.constant dense<0.000000e+00> : vector<8x32xf32>
    %6 = tpu.matmul %4, %5, %cst {dimension_numbers = #tpu.dot_dimension_numbers<[1], [0], [0], [1], [0, 0, 1, 1], [], []>} : vector<8x32xf32>, vector<32x32xf32>, vector<8x32xf32> -> vector<8x32xf32>
    %c0_5 = arith.constant 0 : index
    %c0_6 = arith.constant 0 : index
    %7 = vector.load %arg4[%c0_5, %c0_6] : memref<1x32xf32, #tpu.memory_space<vmem>>, vector<1x32xf32>
    %8 = vector.broadcast %7 : vector<1x32xf32> to vector<8x32xf32>
    %9 = arith.addf %6, %8 : vector<8x32xf32>
    %cst_7 = arith.constant 0.353553385 : f32
    %10 = vector.broadcast %cst_7 : f32 to vector<8x32xf32>
    %11 = arith.mulf %9, %10 : vector<8x32xf32>
    %c0_8 = arith.constant 0 : index
    %c0_9 = arith.constant 0 : index
    %12 = vector.load %arg14[%c0_8, %c0_9] : memref<8x32xf32, #tpu.memory_space<vmem>>, vector<8x32xf32>
    %c0_10 = arith.constant 0 : index
    %c0_11 = arith.constant 0 : index
    %13 = vector.load %arg15[%c0_10, %c0_11] : memref<8x32xf32, #tpu.memory_space<vmem>>, vector<8x32xf32>
    %14 = vector.extract_strided_slice %11 {offsets = [0, 0], sizes = [8, 8], strides = [1, 1]} : vector<8x32xf32> to vector<8x8xf32>
    %15 = vector.extract_strided_slice %12 {offsets = [0, 0], sizes = [8, 8], strides = [1, 1]} : vector<8x32xf32> to vector<8x8xf32>
    %16 = vector.extract_strided_slice %13 {offsets = [0, 0], sizes = [8, 8], strides = [1, 1]} : vector<8x32xf32> to vector<8x8xf32>
    %cst_12 = arith.constant dense<0.000000e+00> : vector<8x8xf32>
    %17 = tpu.matmul %14, %15, %cst_12 {dimension_numbers = #tpu.dot_dimension_numbers<[1], [1], [0], [0], [0, 0, 1, 0], [], []>} : vector<8x8xf32>, vector<8x8xf32>, vector<8x8xf32> -> vector<8x8xf32>
    %cst_13 = arith.constant dense<0xFF800000> : vector<8xf32>
    %18 = vector.multi_reduction <maximumf>, %17, %cst_13 [1] : vector<8x8xf32> to vector<8xf32>
    %19 = vector.shape_cast %18 : vector<8xf32> to vector<8x1xf32>
    %20 = vector.broadcast %19 : vector<8x1xf32> to vector<8x8xf32>
    %21 = arith.subf %17, %20 : vector<8x8xf32>
    %22 = math.exp %21 : vector<8x8xf32>
    %cst_14 = arith.constant dense<0.000000e+00> : vector<8xf32>
    %23 = vector.multi_reduction <add>, %22, %cst_14 [1] : vector<8x8xf32> to vector<8xf32>
    %24 = vector.shape_cast %23 : vector<8xf32> to vector<8x1xf32>
    %25 = vector.broadcast %24 : vector<8x1xf32> to vector<8x8xf32>
    %26 = arith.divf %22, %25 : vector<8x8xf32>
    %cst_15 = arith.constant dense<0.000000e+00> : vector<8x8xf32>
    %27 = tpu.matmul %26, %16, %cst_15 {dimension_numbers = #tpu.dot_dimension_numbers<[1], [0], [0], [1], [0, 0, 1, 1], [], []>} : vector<8x8xf32>, vector<8x8xf32>, vector<8x8xf32> -> vector<8x8xf32>
    %c0_16 = arith.constant 0 : index
    %c0_17 = arith.constant 0 : index
    %28 = vector.load %arg16[%c0_16, %c0_17] : memref<8x32xf32, #tpu.memory_space<vmem>>, vector<8x8xf32>
    tpu.vector_store %arg16[%c0_16, %c0_17], %27 {strides = array<i32>} : memref<8x32xf32, #tpu.memory_space<vmem>>, vector<8x8xf32>,
    %29 = vector.extract_strided_slice %11 {offsets = [0, 8], sizes = [8, 8], strides = [1, 1]} : vector<8x32xf32> to vector<8x8xf32>
    %30 = vector.extract_strided_slice %12 {offsets = [0, 8], sizes = [8, 8], strides = [1, 1]} : vector<8x32xf32> to vector<8x8xf32>
    %31 = vector.extract_strided_slice %13 {offsets = [0, 8], sizes = [8, 8], strides = [1, 1]} : vector<8x32xf32> to vector<8x8xf32>
    %cst_18 = arith.constant dense<0.000000e+00> : vector<8x8xf32>
    %32 = tpu.matmul %29, %30, %cst_18 {dimension_numbers = #tpu.dot_dimension_numbers<[1], [1], [0], [0], [0, 0, 1, 0], [], []>} : vector<8x8xf32>, vector<8x8xf32>, vector<8x8xf32> -> vector<8x8xf32>
    %cst_19 = arith.constant dense<0xFF800000> : vector<8xf32>
    %33 = vector.multi_reduction <maximumf>, %32, %cst_19 [1] : vector<8x8xf32> to vector<8xf32>
    %34 = vector.shape_cast %33 : vector<8xf32> to vector<8x1xf32>
    %35 = vector.broadcast %34 : vector<8x1xf32> to vector<8x8xf32>
    %36 = arith.subf %32, %35 : vector<8x8xf32>
    %37 = math.exp %36 : vector<8x8xf32>
    %cst_20 = arith.constant dense<0.000000e+00> : vector<8xf32>
    %38 = vector.multi_reduction <add>, %37, %cst_20 [1] : vector<8x8xf32> to vector<8xf32>
    %39 = vector.shape_cast %38 : vector<8xf32> to vector<8x1xf32>
    %40 = vector.broadcast %39 : vector<8x1xf32> to vector<8x8xf32>
    %41 = arith.divf %37, %40 : vector<8x8xf32>
    %cst_21 = arith.constant dense<0.000000e+00> : vector<8x8xf32>
    %42 = tpu.matmul %41, %31, %cst_21 {dimension_numbers = #tpu.dot_dimension_numbers<[1], [0], [0], [1], [0, 0, 1, 1], [], []>} : vector<8x8xf32>, vector<8x8xf32>, vector<8x8xf32> -> vector<8x8xf32>
    %c0_22 = arith.constant 0 : index
    %c8 = arith.constant 8 : index
    %43 = vector.load %arg16[%c0_22, %c8] : memref<8x32xf32, #tpu.memory_space<vmem>>, vector<8x8xf32>
    tpu.vector_store %arg16[%c0_22, %c8], %42 {strides = array<i32>} : memref<8x32xf32, #tpu.memory_space<vmem>>, vector<8x8xf32>,
    %44 = vector.extract_strided_slice %11 {offsets = [0, 16], sizes = [8, 8], strides = [1, 1]} : vector<8x32xf32> to vector<8x8xf32>
    %45 = vector.extract_strided_slice %12 {offsets = [0, 16], sizes = [8, 8], strides = [1, 1]} : vector<8x32xf32> to vector<8x8xf32>
    %46 = vector.extract_strided_slice %13 {offsets = [0, 16], sizes = [8, 8], strides = [1, 1]} : vector<8x32xf32> to vector<8x8xf32>
    %cst_23 = arith.constant dense<0.000000e+00> : vector<8x8xf32>
    %47 = tpu.matmul %44, %45, %cst_23 {dimension_numbers = #tpu.dot_dimension_numbers<[1], [1], [0], [0], [0, 0, 1, 0], [], []>} : vector<8x8xf32>, vector<8x8xf32>, vector<8x8xf32> -> vector<8x8xf32>
    %cst_24 = arith.constant dense<0xFF800000> : vector<8xf32>
    %48 = vector.multi_reduction <maximumf>, %47, %cst_24 [1] : vector<8x8xf32> to vector<8xf32>
    %49 = vector.shape_cast %48 : vector<8xf32> to vector<8x1xf32>
    %50 = vector.broadcast %49 : vector<8x1xf32> to vector<8x8xf32>
    %51 = arith.subf %47, %50 : vector<8x8xf32>
    %52 = math.exp %51 : vector<8x8xf32>
    %cst_25 = arith.constant dense<0.000000e+00> : vector<8xf32>
    %53 = vector.multi_reduction <add>, %52, %cst_25 [1] : vector<8x8xf32> to vector<8xf32>
    %54 = vector.shape_cast %53 : vector<8xf32> to vector<8x1xf32>
    %55 = vector.broadcast %54 : vector<8x1xf32> to vector<8x8xf32>
    %56 = arith.divf %52, %55 : vector<8x8xf32>
    %cst_26 = arith.constant dense<0.000000e+00> : vector<8x8xf32>
    %57 = tpu.matmul %56, %46, %cst_26 {dimension_numbers = #tpu.dot_dimension_numbers<[1], [0], [0], [1], [0, 0, 1, 1], [], []>} : vector<8x8xf32>, vector<8x8xf32>, vector<8x8xf32> -> vector<8x8xf32>
    %c0_27 = arith.constant 0 : index
    %c16 = arith.constant 16 : index
    %58 = vector.load %arg16[%c0_27, %c16] : memref<8x32xf32, #tpu.memory_space<vmem>>, vector<8x8xf32>
    tpu.vector_store %arg16[%c0_27, %c16], %57 {strides = array<i32>} : memref<8x32xf32, #tpu.memory_space<vmem>>, vector<8x8xf32>,
    %59 = vector.extract_strided_slice %11 {offsets = [0, 24], sizes = [8, 8], strides = [1, 1]} : vector<8x32xf32> to vector<8x8xf32>
    %60 = vector.extract_strided_slice %12 {offsets = [0, 24], sizes = [8, 8], strides = [1, 1]} : vector<8x32xf32> to vector<8x8xf32>
    %61 = vector.extract_strided_slice %13 {offsets = [0, 24], sizes = [8, 8], strides = [1, 1]} : vector<8x32xf32> to vector<8x8xf32>
    %cst_28 = arith.constant dense<0.000000e+00> : vector<8x8xf32>
    %62 = tpu.matmul %59, %60, %cst_28 {dimension_numbers = #tpu.dot_dimension_numbers<[1], [1], [0], [0], [0, 0, 1, 0], [], []>} : vector<8x8xf32>, vector<8x8xf32>, vector<8x8xf32> -> vector<8x8xf32>
    %cst_29 = arith.constant dense<0xFF800000> : vector<8xf32>
    %63 = vector.multi_reduction <maximumf>, %62, %cst_29 [1] : vector<8x8xf32> to vector<8xf32>
    %64 = vector.shape_cast %63 : vector<8xf32> to vector<8x1xf32>
    %65 = vector.broadcast %64 : vector<8x1xf32> to vector<8x8xf32>
    %66 = arith.subf %62, %65 : vector<8x8xf32>
    %67 = math.exp %66 : vector<8x8xf32>
    %cst_30 = arith.constant dense<0.000000e+00> : vector<8xf32>
    %68 = vector.multi_reduction <add>, %67, %cst_30 [1] : vector<8x8xf32> to vector<8xf32>
    %69 = vector.shape_cast %68 : vector<8xf32> to vector<8x1xf32>
    %70 = vector.broadcast %69 : vector<8x1xf32> to vector<8x8xf32>
    %71 = arith.divf %67, %70 : vector<8x8xf32>
    %cst_31 = arith.constant dense<0.000000e+00> : vector<8x8xf32>
    %72 = tpu.matmul %71, %61, %cst_31 {dimension_numbers = #tpu.dot_dimension_numbers<[1], [0], [0], [1], [0, 0, 1, 1], [], []>} : vector<8x8xf32>, vector<8x8xf32>, vector<8x8xf32> -> vector<8x8xf32>
    %c0_32 = arith.constant 0 : index
    %c24 = arith.constant 24 : index
    %73 = vector.load %arg16[%c0_32, %c24] : memref<8x32xf32, #tpu.memory_space<vmem>>, vector<8x8xf32>
    tpu.vector_store %arg16[%c0_32, %c24], %72 {strides = array<i32>} : memref<8x32xf32, #tpu.memory_space<vmem>>, vector<8x8xf32>,
    %c0_33 = arith.constant 0 : index
    %c0_34 = arith.constant 0 : index
    %74 = vector.load %arg16[%c0_33, %c0_34] : memref<8x32xf32, #tpu.memory_space<vmem>>, vector<8x32xf32>
    %c0_35 = arith.constant 0 : index
    %c0_36 = arith.constant 0 : index
    %75 = vector.load %arg9[%c0_35, %c0_36] : memref<32x32xf32, #tpu.memory_space<vmem>>, vector<32x32xf32>
    %cst_37 = arith.constant dense<0.000000e+00> : vector<8x32xf32>
    %76 = tpu.matmul %74, %75, %cst_37 {dimension_numbers = #tpu.dot_dimension_numbers<[1], [0], [0], [1], [0, 0, 1, 1], [], []>} : vector<8x32xf32>, vector<32x32xf32>, vector<8x32xf32> -> vector<8x32xf32>
    %c0_38 = arith.constant 0 : index
    %c0_39 = arith.constant 0 : index
    %77 = vector.load %arg10[%c0_38, %c0_39] : memref<1x32xf32, #tpu.memory_space<vmem>>, vector<1x32xf32>
    %78 = vector.broadcast %77 : vector<1x32xf32> to vector<8x32xf32>
    %79 = arith.addf %76, %78 : vector<8x32xf32>
    %80 = arith.addf %4, %79 : vector<8x32xf32>
    %cst_40 = arith.constant dense<0.000000e+00> : vector<8xf32>
    %81 = vector.multi_reduction <add>, %80, %cst_40 [1] : vector<8x32xf32> to vector<8xf32>
    %82 = vector.shape_cast %81 : vector<8xf32> to vector<8x1xf32>
    %cst_41 = arith.constant 3.200000e+01 : f32
    %83 = vector.broadcast %cst_41 : f32 to vector<8x1xf32>
    %84 = arith.divf %82, %83 : vector<8x1xf32>
    %85 = vector.broadcast %84 : vector<8x1xf32> to vector<8x32xf32>
    %86 = arith.subf %80, %85 : vector<8x32xf32>
    %87 = arith.mulf %86, %86 : vector<8x32xf32>
    %cst_42 = arith.constant dense<0.000000e+00> : vector<8xf32>
    %88 = vector.multi_reduction <add>, %87, %cst_42 [1] : vector<8x32xf32> to vector<8xf32>
    %89 = vector.shape_cast %88 : vector<8xf32> to vector<8x1xf32>
    %cst_43 = arith.constant 3.200000e+01 : f32
    %90 = vector.broadcast %cst_43 : f32 to vector<8x1xf32>
    %91 = arith.divf %89, %90 : vector<8x1xf32>
    %cst_44 = arith.constant 9.99999974E-6 : f32
    %92 = vector.broadcast %cst_44 : f32 to vector<8x1xf32>
    %93 = arith.addf %91, %92 : vector<8x1xf32>
    %94 = math.rsqrt %93 : vector<8x1xf32>
    %95 = vector.broadcast %94 : vector<8x1xf32> to vector<8x32xf32>
    %96 = arith.mulf %86, %95 : vector<8x32xf32>
    %c0_45 = arith.constant 0 : index
    %c0_46 = arith.constant 0 : index
    %97 = vector.load %arg11[%c0_45, %c0_46] : memref<1x32xf32, #tpu.memory_space<vmem>>, vector<1x32xf32>
    %98 = vector.broadcast %97 : vector<1x32xf32> to vector<8x32xf32>
    %99 = arith.mulf %96, %98 : vector<8x32xf32>
    %c0_47 = arith.constant 0 : index
    %c0_48 = arith.constant 0 : index
    %100 = vector.load %arg12[%c0_47, %c0_48] : memref<1x32xf32, #tpu.memory_space<vmem>>, vector<1x32xf32>
    %101 = vector.broadcast %100 : vector<1x32xf32> to vector<8x32xf32>
    %102 = arith.addf %99, %101 : vector<8x32xf32>
    %c0_49 = arith.constant 0 : index
    %c0_50 = arith.constant 0 : index
    %c0_51 = arith.constant 0 : index
    %103 = vector.load %arg13[%c0_49, %c0_50, %c0_51] : memref<1x8x32xf32, #tpu.memory_space<vmem>>, vector<1x8x32xf32>
    %104 = vector.shape_cast %103 : vector<1x8x32xf32> to vector<8x32xf32>
    %105 = vector.shape_cast %102 : vector<8x32xf32> to vector<1x8x32xf32>
    tpu.vector_store %arg13[%c0_49, %c0_50, %c0_51], %105 {strides = array<i32>} : memref<1x8x32xf32, #tpu.memory_space<vmem>>, vector<1x8x32xf32>,
    return
  }
  func.func @transform_0(%arg0: i32, %arg1: i32) -> (i32, i32, i32) {
    %c0_i32 = arith.constant 0 : i32
    %c0_i32_0 = arith.constant 0 : i32
    %c0_i32_1 = arith.constant 0 : i32
    return %arg0, %c0_i32, %c0_i32_0 : i32, i32, i32
  }
  func.func @transform_1(%arg0: i32, %arg1: i32) -> (i32, i32) {
    %c0_i32 = arith.constant 0 : i32
    %c0_i32_0 = arith.constant 0 : i32
    %c0_i32_1 = arith.constant 0 : i32
    return %c0_i32, %c0_i32_0 : i32, i32
  }
  func.func @transform_2(%arg0: i32, %arg1: i32) -> (i32, i32) {
    %c0_i32 = arith.constant 0 : i32
    %c0_i32_0 = arith.constant 0 : i32
    %c0_i32_1 = arith.constant 0 : i32
    return %c0_i32, %c0_i32_0 : i32, i32
  }
  func.func @transform_3(%arg0: i32, %arg1: i32) -> (i32, i32) {
    %c0_i32 = arith.constant 0 : i32
    %c0_i32_0 = arith.constant 0 : i32
    %c0_i32_1 = arith.constant 0 : i32
    return %c0_i32, %c0_i32_0 : i32, i32
  }
  func.func @transform_4(%arg0: i32, %arg1: i32) -> (i32, i32) {
    %c0_i32 = arith.constant 0 : i32
    %c0_i32_0 = arith.constant 0 : i32
    %c0_i32_1 = arith.constant 0 : i32
    return %c0_i32, %c0_i32_0 : i32, i32
  }
  func.func @transform_5(%arg0: i32, %arg1: i32) -> (i32, i32) {
    %c0_i32 = arith.constant 0 : i32
    %c0_i32_0 = arith.constant 0 : i32
    %c0_i32_1 = arith.constant 0 : i32
    return %c0_i32, %c0_i32_0 : i32, i32
  }
  func.func @transform_6(%arg0: i32, %arg1: i32) -> (i32, i32) {
    %c0_i32 = arith.constant 0 : i32
    %c0_i32_0 = arith.constant 0 : i32
    %c0_i32_1 = arith.constant 0 : i32
    return %c0_i32, %c0_i32_0 : i32, i32
  }
  func.func @transform_7(%arg0: i32, %arg1: i32) -> (i32, i32) {
    %c0_i32 = arith.constant 0 : i32
    %c0_i32_0 = arith.constant 0 : i32
    %c0_i32_1 = arith.constant 0 : i32
    return %c0_i32, %c0_i32_0 : i32, i32
  }
  func.func @transform_8(%arg0: i32, %arg1: i32) -> (i32, i32) {
    %c0_i32 = arith.constant 0 : i32
    %c0_i32_0 = arith.constant 0 : i32
    %c0_i32_1 = arith.constant 0 : i32
    return %c0_i32, %c0_i32_0 : i32, i32
  }
  func.func @transform_9(%arg0: i32, %arg1: i32) -> (i32, i32) {
    %c0_i32 = arith.constant 0 : i32
    %c0_i32_0 = arith.constant 0 : i32
    %c0_i32_1 = arith.constant 0 : i32
    return %c0_i32, %c0_i32_0 : i32, i32
  }
  func.func @transform_10(%arg0: i32, %arg1: i32) -> (i32, i32) {
    %c0_i32 = arith.constant 0 : i32
    %c0_i32_0 = arith.constant 0 : i32
    %c0_i32_1 = arith.constant 0 : i32
    return %c0_i32, %c0_i32_0 : i32, i32
  }
  func.func @transform_11(%arg0: i32, %arg1: i32) -> (i32, i32, i32) {
    %c0_i32 = arith.constant 0 : i32
    %c0_i32_0 = arith.constant 0 : i32
    return %arg0, %arg1, %c0_i32 : i32, i32, i32
  }
}

</mosaic_0001>

<bundles_post_ra>
// kernel: tpu_custom_call.1
= control target key start
LH: loop header
LB: loop body
LE: loop exit
PB: predicated region body
PF: predicated region fallthrough
CT: control target
= control target key end

     0   :  { %s1857_s0 = inlined_call_operand.hbm [shape: f32[2,8,32], index: 0, kind: input, shape index: {}]   ;;  %s1858_s1 = inlined_call_operand.hbm [shape: f32[32,32], index: 1, kind: input, shape index: {}]   ;;  %s1859_s2 = inlined_call_operand.vmem [shape: f32[1,32], index: 2, kind: input, shape index: {}]   ;;  %s1860_s3 = inlined_call_operand.hbm [shape: f32[32,32], index: 3, kind: input, shape index: {}]   ;;  %s1861_s4 = inlined_call_operand.vmem [shape: f32[1,32], index: 4, kind: input, shape index: {}]   ;;  %s1862_s5 = inlined_call_operand.hbm [shape: f32[32,32], index: 5, kind: input, shape index: {}]   ;;  %s1863_s6 = inlined_call_operand.vmem [shape: f32[1,32], index: 6, kind: input, shape index: {}]   ;;  %s1864_s7 = inlined_call_operand.hbm [shape: f32[32,32], index: 7, kind: input, shape index: {}]   ;;  %s1865_s8 = inlined_call_operand.vmem [shape: f32[1,32], index: 8, kind: input, shape index: {}]   ;;  %s1866_s9 = inlined_call_operand.vmem [shape: f32[1,32], index: 9, kind: input, shape index: {}]   ;;  %s1867_s10 = inlined_call_operand.vmem [shape: f32[1,32], index: 10, kind: input, shape index: {}]   ;;  %s1868_s11 = inlined_call_operand.hbm [shape: f32[2,8,32], index: 11, kind: output, shape index: {}]  }
   0x1   :  { %1870 = sst [smem:[#allocation19_spill]] %s1858_s1 }
   0x2   :  { %1871 = sst [smem:[#allocation20_spill]] %s1860_s3 }
   0x3   :  { %1872 = sst [smem:[#allocation21_spill]] %s1862_s5 }
   0x4   :  { %1873 = sst [smem:[#allocation22_spill]] %s1864_s7 }
   0x5   :  { %1874 = sst [smem:[#allocation23_spill]] %s1867_s10 }
   0x6   :  { %16 = vsyncpa [#allocation6], 0 }
   0x7   :  { %18 = vsyncpa [#allocation6 + $0x1], 0 }
   0x8   :  { %19 = vsyncpa [#allocation9], 0 }
   0x9   :  { %20 = vsyncpa [#allocation12], 0 }
   0xa   :  { %21 = vsyncpa [#allocation7], 0 }
   0xb   :  { %23 = vsyncpa [#allocation7 + $0x1], 0  ;;  %s1612_s17 = smov 0   ;;  %s1614_s18 = smov 0  }
   0xc   :  { %s1616_s19 = smov 0   ;;  %s1618_s20 = smov 0  }
   0xd   :  { %s1620_s21 = smov 0   ;;  %s1622_s22 = smov 0  }
   0xe LB: > { %s1869_s23 = sadd.s32 4294967295, %s1537_s22   ;;  %p1124_p0 = scmp.ge.s32.totalorder %s1537_s22, 1  ;;  %s1537_s22 = sphi %s1622_s22, %s29_s22   ;;  %s1533_s21 = sphi %s1620_s21, %s1891_s21   ;;  %s1529_s20 = sphi %s1618_s20, %s1890_s20   ;;  %s1525_s19 = sphi %s1616_s19, %s1889_s19   ;;  %s1521_s18 = sphi %s1614_s18, %s1888_s18   ;;  %s1517_s17 = sphi %s1612_s17, %s1887_s17  }
   0xf   : > { %p1646_p1 = scmp.eq.s32.totalorder %s1869_s23, 0  ;;  %p310_p2 = scmp.lt.s32.totalorder %s1537_s22, 3 }
  0x10   : > { %s1876_s1 = sld [smem:[#allocation19_spill]]  ;;  %s1539_s29 = smov [#allocation8]  }
  0x11   : > { %p1654_p3 = pnand %p1124_p0, %p310_p2  ;;  %s323_s30 = sshll.u32 %s1539_s29, 4  ;;  %s324_s30 = int_to_ptr.vmem [resolvable:$true] %s323_s30 }
  0x12   : > { %p1129_p6 = scmp.ge.s32.totalorder %s1537_s22, 2  ;;  %s1879_s5 = sld [smem:[#allocation21_spill]] }
  0x13   : > { %p1179_p4 = pneg %p1654_p3  ;;  %s1540_s16 = smov 128  }
  0x14   : > { %s1541_s25 = smov 8   ;;  %s1542_s26 = smov [#allocation11]  }
  0x15   : > { %p1662_p5 = pnand %p1179_p4, %p1646_p1  ;;  %s357_s29 = sshll.u32 %s1542_s26, 4  ;;  %s358_s29 = int_to_ptr.vmem [resolvable:$true] %s357_s29 }
  0x16   : > { %s321_s27 = sshll.u32 %s1876_s1, 4  ;;  %s1880_s3 = sld [smem:[#allocation20_spill]]  ;;  %s322_s27 = int_to_ptr.hbm [resolvable:$true] %s321_s27 }
  0x17   : > { %1182 = dma.hbm_to_vmem [thread:$0]  (!%p1662_p5), %s322_s27, 512, %s324_s30, [#allocation9], %s1540_s16, %s1540_s16, %s1541_s25  }
  0x18   : > { %s355_s15 = sshll.u32 %s1879_s5, 4  ;;  %s1881_s7 = sld [smem:[#allocation22_spill]]  ;;  %s356_s15 = int_to_ptr.hbm [resolvable:$true] %s355_s15 }
  0x19   : > { %1188 = dma.hbm_to_vmem [thread:$0]  (!%p1662_p5), %s356_s15, 512, %s358_s29, [#allocation12], %s1540_s16, %s1540_s16, %s1541_s25  }
  0x1a   : > { %s1543_s30 = smov [#allocation10]   ;;  %s1544_s1 = smov [#allocation13]  }
  0x1b   : > { %s340_s26 = sshll.u32 %s1543_s30, 4  ;;  %s374_s23 = sshll.u32 %s1544_s1, 4  ;;  %s341_s26 = int_to_ptr.vmem [resolvable:$true] %s340_s26  ;;  %s375_s23 = int_to_ptr.vmem [resolvable:$true] %s374_s23 }
  0x1c   : > { %s338_s10 = sshll.u32 %s1880_s3, 4  ;;  %s41_s15 = sadd.s32 1, %s1533_s21  ;;  %s339_s10 = int_to_ptr.hbm [resolvable:$true] %s338_s10 }
  0x1d   : > { %1185 = dma.hbm_to_vmem [thread:$0]  (!%p1662_p5), %s339_s10, 512, %s341_s26, [#allocation9], %s1540_s16, %s1540_s16, %s1541_s25  }
  0x1e   : > { %s372_s27 = sshll.u32 %s1881_s7, 4  ;;  %s1123_s29 = sadd.s32 4294967294, %s1537_s22   ;;  %s373_s27 = int_to_ptr.hbm [resolvable:$true] %s372_s27 }
  0x1f   : > { %1191 = dma.hbm_to_vmem [thread:$0]  (!%p1662_p5), %s373_s27, 512, %s375_s23, [#allocation12], %s1540_s16, %s1540_s16, %s1541_s25  }
  0x20   : > { %p43_p7 = scmp.ge.s32.totalorder %s41_s15, 2  ;;  %s48_s13 = sadd.s32 1, %s1525_s19 }
  0x21   : > { %p55_p8 = scmp.ne.s32.totalorder %s1525_s19, %s1521_s18  ;;  %p56_p9 = scmp.eq.s32.totalorder %s1537_s22, 0 }
  0x22   : > { %s1893_s15 = smov (%p43_p7, %s41_s15), 0  ;;  %p61_p10 = scmp.ne.s32.totalorder %s1521_s18, %s1517_s17 }
  0x23   : > { %s45_s10 = ssub.s32 %s1533_s21, %s1893_s15  ;;  %s1882_s14 = sadd.s32 4294967295, %s1537_s22  }
  0x24   : > { %p297_p11 = scmp.eq.s32.totalorder %s1882_s14, 1  ;;  %p46_p12 = scmp.eq.s32.totalorder %s45_s10, 0 }
  0x25   : > { %p1700_p13 = por %p1646_p1, %p61_p10  ;;  %p303_p2 = scmp.eq.s32.totalorder %s1123_s29, 1 }
  0x26   : > { %p1704_p0 = por %p297_p11, %p55_p8  ;;  %p57_p4 = por %p56_p9, %p55_p8 }
  0x27   : > { %s1709_s25 = scalar_select %p46_p12, %s1525_s19, %s48_s13  }
  0x28   : > { %p1711_p5 = por %p303_p2, %p61_p10  ;;  %s397_s30 = sand.u32 1, %s1525_s19  }
  0x29   : > { %s1131_s26 = sshll.u32 %s1533_s21, 3  ;;  %p1204_p7 = scmp.lt.s32.totalorder %s1537_s22, 2 }
  0x2a   : > { %s1130_s1 = sshll.u32 %s397_s30, 3  ;;  %s405_s14 = scalar_lea.hbm %s1857_s0, %s1131_s26 }
  0x2b   : > { %s407_s3 = sshll.u32 %s405_s14, 4  ;;  %s401_s5 = scalar_lea.vmem [#allocation5], %s1130_s1  ;;  %s408_s3 = int_to_ptr.hbm [resolvable:$true] %s407_s3 }
  0x2c   : > { %s409_s7 = sshll.u32 %s401_s5, 4  ;;  %p1193_p11 = pnand %p1204_p7, %p57_p4  ;;  %s410_s7 = int_to_ptr.vmem [resolvable:$true] %s409_s7 }
  0x2d   : > { %s398_s29 = scalar_lea.sflag [#allocation6], %s397_s30  ;;  %418 = sbr.rel (%p1654_p3) target bundleno = 1382 (0x566), region = 64 }
  0x2e   : > { %1195 = dma.hbm_to_vmem [thread:$0]  (!%p1193_p11), %s408_s3, 128, %s410_s7, %s398_s29  }
  0x2f   : > { %s1724_s13 = sand.u32 (!%p1654_p3), 1, %s1521_s18  }
  0x30   : > { %s1133_s23 = sshll.u32 (!%p1654_p3), %s1724_s13, 3  ;;  %s421_s26 = scalar_lea.sflag (!%p1654_p3), [#allocation6], %s1724_s13 }
  0x31   : > { %s424_s1 = scalar_lea.vmem (!%p1654_p3), [#allocation5], %s1133_s23 }
  0x32   : > { %1500 = dma.done.wait (%p1700_p13), %s421_s26, 128  }
  0x33   : > { %1502 = vsyncadd (%p1700_p13), %s421_s26, 4294967168 }
  0x34   : > { %1504 = dma.done.wait (%p1646_p1), [#allocation9], 1024  }
  0x35   : > { %1506 = vsyncadd (%p1646_p1), [#allocation9], 4294966272 }
  0x36   : > { %1508 = dma.done.wait (%p1646_p1), [#allocation12], 1024  }
  0x37   : > { %1510 = vsyncadd (%p1646_p1), [#allocation12], 4294966272  ;;  %v492_v0 = vld [vmem:[#allocation10 + $0x18] sm:$0xff]  ;;  %v491_v1 = vld [vmem:[#allocation10 + $0x10] sm:$0xff]  ;;  %vm497_vm0 = vcmask 261120   ;;  %vm587_vm1 = vcmask 64512  }
  0x38   : > { %v555_v2 = vld [vmem:[#allocation8 + $0x18] sm:$0xff]  ;;  %513 = vmatpush.msra.mxu0 %v492_v0  ;;  %v554_v3 = vld [vmem:[#allocation8 + $0x10] sm:$0xff]  ;;  %v490_v4 = vld [vmem:[#allocation10 + $0x8] sm:$0xff]  ;;  %s1545_s28 = smov 104   ;;  %s1546_s12 = smov 120  }
  0x39   : > { %576 = vmatpush.msra.mxu2 %v555_v2  ;;  %v489_v5 = vld [vmem:[#allocation10] sm:$0xff]  ;;  %v553_v6 = vld [vmem:[#allocation8 + $0x8] sm:$0xff]  ;;  %v1742_v8 = vld [vmem:[%s424_s1] sm:$0xff]  ;;  %s1547_s30 = smov 112   ;;  %s1548_s29 = smov 8  }
  0x3a   : > { %514 = vmatpush.msra.mxu0 %v491_v1  ;;  %v552_v7 = vld [vmem:[#allocation8] sm:$0xff]  ;;  %v1271_v9 = vld [vmem:[%s1861_s4] ss:$0 sm:$0xff]  ;;  %v524_v26 = vld [vmem:[#allocation11 + $0x10] sm:$0xff]  ;;  %s1549_s26 = smov 16   ;;  %s1550_s1 = smov 24  }
  0x3b   : > { %577 = vmatpush.msra.mxu2 %v554_v3  ;;  %v1272_v12 = vld [vmem:[%s1859_s2] ss:$0 sm:$0xff]  ;;  %v523_v27 = vld [vmem:[#allocation11 + $0x8] sm:$0xff]  ;;  %v522_v28 = vld [vmem:[#allocation11] sm:$0xff]  ;;  %s1156_s7 = sshll.u32 %s1529_s20, 3  ;;  %s483_s20 = scalar_lea.vmem [#allocation14], %s1133_s23 }
  0x3c   : > { %515 = vmatpush.msra.mxu0 %v490_v4  ;;  %v525_v25 = vld [vmem:[#allocation11 + $0x18] sm:$0xff]  ;;  %s1000_s10 = scalar_lea.hbm %s1868_s11, %s1156_s7  ;;  %s989_s5 = scalar_lea.sflag [#allocation7], %s1724_s13 }
  0x3d   : > { %578 = vmatpush.msra.mxu2 %v553_v6  ;;  %542 = vmatpush.msra.mxu1 %v525_v25  ;;  %v1273_v40 = vld [vmem:[%s1863_s6] ss:$0 sm:$0xff]  ;;  %s1004_s3 = sshll.u32 %s1000_s10, 4  ;;  %s1467_s23 = scalar_lea.hbm %s1868_s11, 16  ;;  %s1005_s3 = int_to_ptr.hbm [resolvable:$true] %s1004_s3 }
  0x3e   : > { %516 = vmatpush.msra.mxu0 %v489_v5  ;;  %s1461_s24 = sshra.s32 %s1005_s3, 4  ;;  %s1462_s24 = int_to_ptr.hbm [resolvable:$true] %s1461_s24 }
  0x3f   : > { %579 = vmatpush.msra.mxu2 %v552_v7  ;;  %1139 = vmatmul.msk.f32.vlgmr.msra.gmra.mxu0 %vm497_vm0, %v1742_v8  ;;  %s1463_s7 = scalar_lea.hbm %s1462_s24, 8  ;;  %p1468_p9 = scmp.lt.s32.totalorder %s1462_s24, %s1868_s11 }
  0x40   : > { %1141 = vmatmul.msk.f32.vlgmr.msra.gmra.mxu2 %vm497_vm0, %v1742_v8  ;;  %543 = vmatpush.msra.mxu1 %v524_v26  ;;  %p1464_p1 = scmp.ne.s32.totalorder %s1462_s24, %s1463_s7  ;;  %p1469_p10 = scmp.lt.s32.totalorder %s1467_s23, %s1463_s7 }
  0x42   : > { %544 = vmatpush.msra.mxu1 %v523_v27  ;;  %p1465_p3 = pnand %p1464_p1, %p1704_p0  ;;  %p1470_p12 = por %p1469_p10, %p1468_p9 }
  0x44   : > { %545 = vmatpush.msra.mxu1 %v522_v28  ;;  %p1466_p8 = pneg %p1465_p3 }
  0x45   : > { %1140 = vmatmul.msk.f32.vlgmr.msra.gmra.mxu1 %vm497_vm0, %v1742_v8 }
  0x46   : > { %p1471_p13 = pnand %p1470_p12, %p1466_p8 }
  0xbc   : > { %v518_v10 = vpop.f32.mrf.mxu0 }
  0xbd   : > { %v519_v11 = vadd.f32 %v1271_v9, %v518_v10 }
  0xbf   : > { %521 = vst.msk [vmem:[#allocation2] sm:$0xff] %vm497_vm0, %v519_v11 }
  0xc2   : > { %v547_v41 = vpop.f32.mrf.mxu1 }
  0xc3   : > { %v581_v13 = vpop.f32.mrf.mxu2  ;;  %v548_v42 = vadd.f32 %v1273_v40, %v547_v41 }
  0xc4   : > { %v582_v14 = vadd.f32 %v1272_v12, %v581_v13 }
  0xc5   : > { %550 = vst.msk [vmem:[#allocation3] sm:$0xff] %vm497_vm0, %v548_v42 }
  0xc6   : > { %v585_v15 = vld [vmem:[#allocation2] sm:$0xff]  ;;  %v584_v16 = vmul.f32 0.35355338, %v582_v14 }
  0xc7   : > { %833 = vrot.lane.b32.xlu2 %v585_v15, %s1545_s28  ;;  %664 = vrot.lane.b32.xlu1 %v585_v15, %s1546_s12 }
  0xc8   : > { %749 = vrot.lane.b32.xlu0 %v585_v15, %s1547_s30  ;;  %1142 = vmatpush.xpose.msk.msra.mxu3 %vm587_vm1, %v585_v15 }
  0xcb   : > { %1143 = vmatmul.msk.f32.vlgmr.msra.gmra.mxu3 %vm587_vm1, %v584_v16 }
  0xcc   : > { %v586_v45 = vld [vmem:[#allocation3] sm:$0xff] }
  0xcd   : > { %656 = vmatpush.msrb.mxu3 %v586_v45 }
  0xcf   : > { %831 = vrot.lane.b32.xlu2 %v584_v16, %s1545_s28  ;;  %662 = vrot.lane.b32.xlu1 %v584_v16, %s1546_s12 }
  0xd0   : > { %747 = vrot.lane.b32.xlu0 %v584_v16, %s1547_s30 }
 0x121   : > { %v834_v18 = vpop.permute.xlu2 %833 }
 0x129   : > { %v832_v22 = vpop.permute.xlu2 %831 }
 0x139   : > { %v665_v17 = vpop.permute.xlu1 %664 }
 0x13a   : > { %v750_v19 = vpop.permute.xlu0 %749  ;;  %1145 = vmatpush.xpose.msk.msrb.mxu0 %vm587_vm1, %v665_v17 }
 0x13b   : > { %1148 = vmatpush.xpose.msk.msrb.mxu2 %vm587_vm1, %v750_v19 }
 0x13e   : > { %1151 = vmatpush.xpose.msk.msra.mxu0 %vm587_vm1, %v834_v18 }
 0x141   : > { %v663_v20 = vpop.permute.xlu1 %662 }
 0x142   : > { %v748_v21 = vpop.permute.xlu0 %747  ;;  %1146 = vmatmul.msk.f32.vlgmr.msrb.gmra.mxu0 %vm587_vm1, %v663_v20 }
 0x143   : > { %1149 = vmatmul.msk.f32.vlgmr.msrb.gmra.mxu2 %vm587_vm1, %v748_v21 }
 0x14a   : > { %1152 = vmatmul.msk.f32.vlgmr.msra.gmra.mxu0 %vm587_vm1, %v832_v22 }
 0x14e   : > { %v611_v23 = vpop.f32.mrf.mxu3 }
 0x14f   : > { %v614_v24 = vsel %vm587_vm1, %v611_v23, -inf }
 0x150   : > { %615 = vmax.xlane.f32.xlu0 %v614_v24 }
 0x1bf   : > { %v687_v29 = vpop.f32.mrf.mxu0 }
 0x1c0   : > { %v690_v30 = vsel %vm587_vm1, %v687_v29, -inf }
 0x1c1   : > { %691 = vmax.xlane.f32.xlu1 %v690_v30 }
 0x1c3   : > { %v616_v31 = vpop.xlane.xlu0 %615 }
 0x1c4   : > { %v617_v32 = vsub.f32 %v611_v23, %v616_v31 }
 0x1c6   : > { %v618_v33 = vmul.f32 1.442695, %v617_v32  ;;  %v772_v34 = vpop.f32.mrf.mxu2 }
 0x1c7   : > { %v775_v35 = vsel %vm587_vm1, %v772_v34, -inf  ;;  %v856_v36 = vpop.f32.mrf.mxu0 }
 0x1c8   : > { %1277 = vpow2.f32 %v618_v33  ;;  %776 = vmax.xlane.f32.xlu2 %v775_v35  ;;  %v859_v38 = vsel %vm587_vm1, %v856_v36, -inf }
 0x1ce   : > { %v1278_v37 = vpop.eup %1277 }
 0x1cf   : > { %v620_v39 = vsel %vm587_vm1, %v1278_v37, 0.0 }
 0x1d0   : > { %860 = vmax.xlane.f32.xlu2 %v859_v38  ;;  %621 = vadd.xlane.f32.xlu0 %v620_v39 }
 0x234   : > { %v692_v43 = vpop.xlane.xlu1 %691 }
 0x235   : > { %v693_v44 = vsub.f32 %v687_v29, %v692_v43 }
 0x237   : > { %v694_v46 = vmul.f32 1.442695, %v693_v44 }
 0x239   : > { %1279 = vpow2.f32 %v694_v46 }
 0x23b   : > { %v777_v47 = vpop.xlane.xlu2 %776 }
 0x23c   : > { %v778_v48 = vsub.f32 %v772_v34, %v777_v47 }
 0x23e   : > { %v779_v49 = vmul.f32 1.442695, %v778_v48 }
 0x23f   : > { %v1780_v50 = vpop.eup %1279 }
 0x240   : > { %1281 = vpow2.f32 %v779_v49  ;;  %v696_v51 = vsel %vm587_vm1, %v1780_v50, 0.0 }
 0x241   : > { %697 = vadd.xlane.f32.xlu1 %v696_v51  ;;  %v919_v51 = vld [vmem:[#allocation13 + $0x18] sm:$0xff] }
 0x242   : > { %939 = vmatpush.msra.mxu2 %v919_v51 }
 0x243   : > { %v861_v52 = vpop.xlane.xlu2 %860  ;;  %v622_v53 = vpop.xlane.xlu0 %621 }
 0x244   : > { %v862_v54 = vsub.f32 %v856_v36, %v861_v52  ;;  %1283 = vrcp.f32 %v622_v53  ;;  %v634_v62 = vand.u32 2147483648, %v622_v53  ;;  %v632_v0 = vand.u32 2147483647, %v622_v53  ;;  %v918_v52 = vld [vmem:[#allocation13 + $0x10] sm:$0xff] }
 0x245   : > { %vm628_vm3 = vweird.f32 %v622_v53  ;;  %940 = vmatpush.msra.mxu2 %v918_v52 }
 0x246   : > { %v1784_v55 = vpop.eup %1281  ;;  %v863_v56 = vmul.f32 1.442695, %v862_v54  ;;  %v635_v3 = vor.u32 1.1754944e-38, %v634_v62  ;;  %vm633_vm5 = vcmp.eq.f32.partialorder %v632_v0, 8.507059e+37  ;;  %v916_v54 = vld [vmem:[#allocation13] sm:$0xff]  ;;  %v1551_v0 = vmov 32.0  }
 0x247   : > { %v781_v57 = vsel %vm587_vm1, %v1784_v55, 0.0 }
 0x248   : > { %1285 = vpow2.f32 %v863_v56  ;;  %782 = vadd.xlane.f32.xlu2 %v781_v57 }
 0x24a   : > { %v1284_v58 = vpop.eup %1283 }
 0x24b   : > { %v624_v59 = vmul.f32 %v1284_v58, %v622_v53  ;;  %vm629_vm2 = vweird.f32 %v1284_v58  ;;  %v917_v53 = vld [vmem:[#allocation13 + $0x8] sm:$0xff] }
 0x24c   : > { %vm630_vm4 = vmor %vm628_vm3, %vm629_vm2  ;;  %941 = vmatpush.msra.mxu2 %v917_v53 }
 0x24d   : > { %v625_v60 = vsub.f32 1.0, %v624_v59  ;;  %v1274_v59 = vld [vmem:[%s1865_s8] ss:$0 sm:$0xff] }
 0x24e   : > { %v1788_v61 = vpop.eup %1285  ;;  %942 = vmatpush.msra.mxu2 %v916_v54 }
 0x24f   : > { %v626_v63 = vmul.f32 %v1284_v58, %v625_v60  ;;  %v865_v1 = vsel %vm587_vm1, %v1788_v61, 0.0 }
 0x250   : > { %866 = vadd.xlane.f32.xlu0 %v865_v1 }
 0x251   : > { %v627_v2 = vadd.f32 %v1284_v58, %v626_v63 }
 0x253   : > { %v631_v4 = vsel %vm630_vm4, %v1284_v58, %v627_v2  ;;  %vm745_vm4 = vcmask 130112  }
 0x254   : > { %v636_v5 = vsel %vm633_vm5, %v635_v3, %v631_v4  ;;  %vm913_vm5 = vcmask 261312  }
 0x255   : > { %v637_v6 = vmul.f32 %v1278_v37, %v636_v5 }
 0x257   : > { %1144 = vmatmul.msk.f32.vlgmr.msrb.gmra.mxu3 %vm587_vm1, %v637_v6 }
 0x25a   : > { %715 = vrot.lane.b32.xlu1 %v586_v45, %s1546_s12 }
 0x260   : > { %799 = vrot.lane.b32.xlu2 %v586_v45, %s1547_s30 }
 0x264   : > { %883 = vrot.lane.b32.xlu0 %v586_v45, %s1545_s28 }
 0x2b4   : > { %v698_v7 = vpop.xlane.xlu1 %697 }
 0x2b5   : > { %1287 = vrcp.f32 %v698_v7  ;;  %v710_v16 = vand.u32 2147483648, %v698_v7  ;;  %vm704_vm7 = vweird.f32 %v698_v7  ;;  %v708_v20 = vand.u32 2147483647, %v698_v7 }
 0x2b7   : > { %v711_v24 = vor.u32 1.1754944e-38, %v710_v16  ;;  %vm709_vm10 = vcmp.eq.f32.partialorder %v708_v20, 8.507059e+37 }
 0x2bb   : > { %v1288_v9 = vpop.eup %1287  ;;  %v783_v10 = vpop.xlane.xlu2 %782 }
 0x2bc   : > { %v700_v11 = vmul.f32 %v1288_v9, %v698_v7  ;;  %1289 = vrcp.f32 %v783_v10  ;;  %vm705_vm6 = vweird.f32 %v1288_v9  ;;  %v795_v22 = vand.u32 2147483648, %v783_v10 }
 0x2bd   : > { %vm706_vm8 = vmor %vm704_vm7, %vm705_vm6  ;;  %v793_v26 = vand.u32 2147483647, %v783_v10  ;;  %vm789_vm11 = vweird.f32 %v783_v10 }
 0x2be   : > { %v701_v12 = vsub.f32 1.0, %v700_v11  ;;  %v796_v30 = vor.u32 1.1754944e-38, %v795_v22 }
 0x2bf   : > { %vm794_vm13 = vcmp.eq.f32.partialorder %v793_v26, 8.507059e+37 }
 0x2c0   : > { %v702_v13 = vmul.f32 %v1288_v9, %v701_v12 }
 0x2c2   : > { %v1290_v14 = vpop.eup %1289  ;;  %v703_v15 = vadd.f32 %v1288_v9, %v702_v13 }
 0x2c3   : > { %v785_v17 = vmul.f32 %v1290_v14, %v783_v10  ;;  %v800_v18 = vpop.permute.xlu2 %799  ;;  %v867_v19 = vpop.xlane.xlu0 %866  ;;  %vm790_vm9 = vweird.f32 %v1290_v14 }
 0x2c4   : > { %1291 = vrcp.f32 %v867_v19  ;;  %820 = vmatpush.msra.mxu3 %v800_v18  ;;  %v707_v23 = vsel %vm706_vm8, %v1288_v9, %v703_v15  ;;  %vm791_vm12 = vmor %vm789_vm11, %vm790_vm9  ;;  %v879_v38 = vand.u32 2147483648, %v867_v19  ;;  %v877_v40 = vand.u32 2147483647, %v867_v19 }
 0x2c5   : > { %v786_v21 = vsub.f32 1.0, %v785_v17  ;;  %v712_v28 = vsel %vm709_vm10, %v711_v24, %v707_v23  ;;  %vm873_vm15 = vweird.f32 %v867_v19  ;;  %1293 = vrcp.f32 %v1551_v0 }
 0x2c6   : > { %v713_v35 = vmul.f32 %v1780_v50, %v712_v28  ;;  %v880_v42 = vor.u32 1.1754944e-38, %v879_v38  ;;  %vm878_vm3 = vcmp.eq.f32.partialorder %v877_v40, 8.507059e+37 }
 0x2c7   : > { %v787_v25 = vmul.f32 %v1290_v14, %v786_v21  ;;  %v1275_v21 = vld [vmem:[%s1866_s9] ss:$0 sm:$0xff] }
 0x2c9   : > { %v788_v27 = vadd.f32 %v1290_v14, %v787_v25 }
 0x2ca   : > { %v1292_v29 = vpop.eup %1291 }
 0x2cb   : > { %v792_v31 = vsel %vm791_vm12, %v1290_v14, %v788_v27  ;;  %v869_v32 = vmul.f32 %v1292_v29, %v867_v19  ;;  %vm874_vm14 = vweird.f32 %v1292_v29  ;;  %v1294_v1 = vpop.eup %1293 }
 0x2cc   : > { %v797_v33 = vsel %vm794_vm13, %v796_v30, %v792_v31  ;;  %v716_v34 = vpop.permute.xlu1 %715  ;;  %vm875_vm2 = vmor %vm873_vm15, %vm874_vm14  ;;  %v952_v2 = vmul.f32 32.0, %v1294_v1  ;;  %vm956_vm6 = vweird.f32 %v1294_v1 }
 0x2cd   : > { %v870_v36 = vsub.f32 1.0, %v869_v32  ;;  %736 = vmatpush.msrb.mxu1 %v716_v34  ;;  %v798_v37 = vmul.f32 %v1784_v55, %v797_v33 }
 0x2ce   : > { %1147 = vmatmul.msk.f32.vlgmr.msrb.gmra.mxu1 %vm587_vm1, %v713_v35  ;;  %v953_v3 = vsub.f32 1.0, %v952_v2 }
 0x2cf   : > { %v871_v39 = vmul.f32 %v1292_v29, %v870_v36  ;;  %1150 = vmatmul.msk.f32.vlgmr.msra.gmra.mxu3 %vm587_vm1, %v798_v37 }
 0x2d0   : > { %v954_v4 = vmul.f32 %v1294_v1, %v953_v3 }
 0x2d1   : > { %v872_v41 = vadd.f32 %v1292_v29, %v871_v39 }
 0x2d2   : > { %v955_v5 = vadd.f32 %v1294_v1, %v954_v4 }
 0x2d3   : > { %v876_v43 = vsel %vm875_vm2, %v1292_v29, %v872_v41 }
 0x2d4   : > { %v881_v44 = vsel %vm878_vm3, %v880_v42, %v876_v43  ;;  %v957_v6 = vsel %vm956_vm6, %v1294_v1, %v955_v5 }
 0x2d5   : > { %v882_v45 = vmul.f32 %v1788_v61, %v881_v44 }
 0x2d6   : > { %v884_v46 = vpop.permute.xlu0 %883 }
 0x2d7   : > { %904 = vmatpush.msra.mxu1 %v884_v46 }
 0x2d8   : > { %1153 = vmatmul.msk.f32.vlgmr.msra.gmra.mxu1 %vm587_vm1, %v882_v45 }
 0x2da   : > { %v658_v47 = vpop.f32.mrf.mxu3 }
 0x2db   : > { %661 = vst.msk [vmem:[#allocation4] sm:$0xff] %vm587_vm1, %v658_v47  ;;  %vm829_vm1 = vcmask 195712  }
 0x34b   : > { %v738_v48 = vpop.f32.mrf.mxu1 }
 0x34c   : > { %742 = vrot.lane.b32.xlu1 %v738_v48, %s1548_s29 }
 0x352   : > { %v822_v49 = vpop.f32.mrf.mxu3 }
 0x353   : > { %826 = vrot.lane.b32.xlu0 %v822_v49, %s1549_s26  ;;  %s1886_s26 = sld [smem:[#allocation23_spill]] }
 0x355   : > { %v906_v50 = vpop.f32.mrf.mxu1 }
 0x356   : > { %910 = vrot.lane.b32.xlu2 %v906_v50, %s1550_s1  ;;  %s1002_s1 = sshll.u32 %s483_s20, 4  ;;  %s1003_s1 = int_to_ptr.vmem [resolvable:$true] %s1002_s1 }
 0x359   : > { %v1276_v24 = vld [vmem:[%s1886_s26] ss:$0 sm:$0xff] }
 0x3b0   : > { %v911_v57 = vpop.permute.xlu2 %910 }
 0x3be   : > { %v743_v55 = vpop.permute.xlu1 %742 }
 0x3bf   : > { %746 = vst.msk [vmem:[#allocation4] sm:$0xff] %vm745_vm4, %v743_v55 }
 0x3c5   : > { %v827_v56 = vpop.permute.xlu0 %826 }
 0x3c6   : > { %830 = vst.msk [vmem:[#allocation4] sm:$0xff] %vm829_vm1, %v827_v56 }
 0x3c7   : > { %914 = vst.msk [vmem:[#allocation4] sm:$0xff] %vm913_vm5, %v911_v57 }
 0x3ce   : > { %v915_v58 = vld [vmem:[#allocation4] sm:$0xff] }
 0x3cf   : > { %1154 = vmatmul.msk.f32.vlgmr.msra.gmra.mxu2 %vm497_vm0, %v915_v58 }
 0x452   : > { %v944_v60 = vpop.f32.mrf.mxu2 }
 0x453   : > { %v945_v61 = vadd.f32 %v1274_v59, %v944_v60 }
 0x455   : > { %v947_v62 = vadd.f32 %v945_v61, %v1742_v8 }
 0x457   : > { %v948_v63 = vsel %vm497_vm0, %v947_v62, 0.0 }
 0x458   : > { %949 = vadd.xlane.f32.xlu1 %v948_v63 }
 0x4cb   : > { %v950_v7 = vpop.xlane.xlu1 %949 }
 0x4cc   : > { %v958_v9 = vmul.f32 %v957_v6, %v950_v7 }
 0x4ce   : > { %v959_v10 = vsub.f32 %v947_v62, %v958_v9 }
 0x4d0   : > { %v960_v11 = vmul.f32 %v959_v10, %v959_v10 }
 0x4d2   : > { %v961_v12 = vsel %vm497_vm0, %v960_v11, 0.0 }
 0x4d3   : > { %962 = vadd.xlane.f32.xlu0 %v961_v12 }
 0x546   : > { %v963_v8 = vpop.xlane.xlu0 %962 }
 0x547   : > { %v964_v13 = vmul.f32 %v963_v8, %v957_v6 }
 0x549   : > { %v965_v14 = vadd.f32 1e-05, %v964_v13 }
 0x54b   : > { %1295 = vrsqrt.f32 %v965_v14  ;;  %vm972_vm8 = vweird.f32 %v965_v14 }
 0x551   : > { %v1296_v15 = vpop.eup %1295 }
 0x552   : > { %v967_v16 = vmul.f32 %v1296_v15, %v965_v14  ;;  %vm973_vm7 = vweird.f32 %v1296_v15 }
 0x553   : > { %vm974_vm9 = vmor %vm972_vm8, %vm973_vm7 }
 0x554   : > { %v968_v17 = vmul.f32 %v1296_v15, %v967_v16 }
 0x556   : > { %v969_v18 = vmul.f32 0.5, %v968_v17 }
 0x558   : > { %v970_v19 = vsub.f32 1.5, %v969_v18 }
 0x55a   : > { %v971_v20 = vmul.f32 %v1296_v15, %v970_v19 }
 0x55c   : > { %v975_v22 = vsel %vm974_vm9, %v1296_v15, %v971_v20 }
 0x55d   : > { %v976_v23 = vmul.f32 %v975_v22, %v959_v10 }
 0x55f   : > { %v981_v25 = vmul.f32 %v1275_v21, %v976_v23 }
 0x561   : > { %v986_v26 = vadd.f32 %v1276_v24, %v981_v25 }
 0x563   : > { %987 = vst.msk [vmem:[%s483_s20] sm:$0xff] %vm497_vm0, %v986_v26 }
 0x564   : > { %1474 = shalt.err (!%p1471_p13)
}
 0x565   : > { %1177 = dma.vmem_to_hbm [thread:$0]  (%p1704_p0), %s1003_s1, 128, %s1005_s3, %s989_s5  }
 0x566 PF: > { %s1016_s13 = sand.u32 1, %s1517_s17   ;;  %p1197_p2 = pnand %p1129_p6, %p1711_p5 }
 0x567   : > { %s1017_s14 = scalar_lea.sflag [#allocation7], %s1016_s13 }
 0x568   : > { %p1198_p4 = pneg %p1197_p2 }
 0x56a   : > { %1512 = dma.done.wait (%p1198_p4), %s1017_s14, 128  }
 0x56b   : > { %1514 = vsyncadd (%p1198_p4), %s1017_s14, 4294967168  ;;  %s29_s22 = sadd.s32 1, %s1537_s22   ;;  %s1887_s17 = smov %s1521_s18 }
 0x56c   : > { %p26_p7 = scmp.ge.s32.totalorder %s29_s22, 4   ;;  %s1888_s18 = smov %s1525_s19 }
 0x56d   : > { %s1889_s19 = smov %s1709_s25  ;;  %s1890_s20 = smov %s1533_s21 }
 0x56e   : > { %s1891_s21 = smov %s1893_s15  ;;  %28 = sbr.rel (!%p26_p7) target bundleno = 14 (0xe), region = 129 }
 0x573   :  { %1023 = vsyncpa [#allocation6], 1 }
 0x574   :  { %1025 = vsyncpa [#allocation6 + $0x1], 1 }
 0x575   :  { %1026 = vsyncpa [#allocation9], 1 }
 0x576   :  { %1027 = vsyncpa [#allocation12], 1 }
 0x577   :  { %1028 = vsyncpa [#allocation7], 1 }
 0x578   :  { %1030 = vsyncpa [#allocation7 + $0x1], 1 }

// kernel: tpu_custom_call.1
= control target key start
LH: loop header
LB: loop body
LE: loop exit
PB: predicated region body
PF: predicated region fallthrough
CT: control target
= control target key end

     0   :  { %s1857_s0 = inlined_call_operand.hbm [shape: f32[2,8,32], index: 0, kind: input, shape index: {}]   ;;  %s1858_s1 = inlined_call_operand.hbm [shape: f32[32,32], index: 1, kind: input, shape index: {}]   ;;  %s1859_s2 = inlined_call_operand.vmem [shape: f32[1,32], index: 2, kind: input, shape index: {}]   ;;  %s1860_s3 = inlined_call_operand.hbm [shape: f32[32,32], index: 3, kind: input, shape index: {}]   ;;  %s1861_s4 = inlined_call_operand.vmem [shape: f32[1,32], index: 4, kind: input, shape index: {}]   ;;  %s1862_s5 = inlined_call_operand.hbm [shape: f32[32,32], index: 5, kind: input, shape index: {}]   ;;  %s1863_s6 = inlined_call_operand.vmem [shape: f32[1,32], index: 6, kind: input, shape index: {}]   ;;  %s1864_s7 = inlined_call_operand.hbm [shape: f32[32,32], index: 7, kind: input, shape index: {}]   ;;  %s1865_s8 = inlined_call_operand.vmem [shape: f32[1,32], index: 8, kind: input, shape index: {}]   ;;  %s1866_s9 = inlined_call_operand.vmem [shape: f32[1,32], index: 9, kind: input, shape index: {}]   ;;  %s1867_s10 = inlined_call_operand.vmem [shape: f32[1,32], index: 10, kind: input, shape index: {}]   ;;  %s1868_s11 = inlined_call_operand.hbm [shape: f32[2,8,32], index: 11, kind: output, shape index: {}]  }
   0x1   :  { %1870 = sst [smem:[#allocation19_spill]] %s1858_s1 }
   0x2   :  { %1871 = sst [smem:[#allocation20_spill]] %s1860_s3 }
   0x3   :  { %1872 = sst [smem:[#allocation21_spill]] %s1862_s5 }
   0x4   :  { %1873 = sst [smem:[#allocation22_spill]] %s1864_s7 }
   0x5   :  { %1874 = sst [smem:[#allocation23_spill]] %s1867_s10 }
   0x6   :  { %16 = vsyncpa [#allocation6], 0 }
   0x7   :  { %18 = vsyncpa [#allocation6 + $0x1], 0 }
   0x8   :  { %19 = vsyncpa [#allocation9], 0 }
   0x9   :  { %20 = vsyncpa [#allocation12], 0 }
   0xa   :  { %21 = vsyncpa [#allocation7], 0 }
   0xb   :  { %23 = vsyncpa [#allocation7 + $0x1], 0  ;;  %s1612_s17 = smov 0   ;;  %s1614_s18 = smov 0  }
   0xc   :  { %s1616_s19 = smov 0   ;;  %s1618_s20 = smov 0  }
   0xd   :  { %s1620_s21 = smov 0   ;;  %s1622_s22 = smov 0  }
   0xe LB: > { %s1869_s23 = sadd.s32 4294967295, %s1537_s22   ;;  %p1124_p0 = scmp.ge.s32.totalorder %s1537_s22, 1  ;;  %s1537_s22 = sphi %s1622_s22, %s29_s22   ;;  %s1533_s21 = sphi %s1620_s21, %s1891_s21   ;;  %s1529_s20 = sphi %s1618_s20, %s1890_s20   ;;  %s1525_s19 = sphi %s1616_s19, %s1889_s19   ;;  %s1521_s18 = sphi %s1614_s18, %s1888_s18   ;;  %s1517_s17 = sphi %s1612_s17, %s1887_s17  }
   0xf   : > { %p1646_p1 = scmp.eq.s32.totalorder %s1869_s23, 0  ;;  %p310_p2 = scmp.lt.s32.totalorder %s1537_s22, 3 }
  0x10   : > { %s1876_s1 = sld [smem:[#allocation19_spill]]  ;;  %s1539_s29 = smov [#allocation8]  }
  0x11   : > { %p1654_p3 = pnand %p1124_p0, %p310_p2  ;;  %s323_s30 = sshll.u32 %s1539_s29, 4  ;;  %s324_s30 = int_to_ptr.vmem [resolvable:$true] %s323_s30 }
  0x12   : > { %p1129_p6 = scmp.ge.s32.totalorder %s1537_s22, 2  ;;  %s1879_s5 = sld [smem:[#allocation21_spill]] }
  0x13   : > { %p1179_p4 = pneg %p1654_p3  ;;  %s1540_s16 = smov 128  }
  0x14   : > { %s1541_s25 = smov 8   ;;  %s1542_s26 = smov [#allocation11]  }
  0x15   : > { %p1662_p5 = pnand %p1179_p4, %p1646_p1  ;;  %s357_s29 = sshll.u32 %s1542_s26, 4  ;;  %s358_s29 = int_to_ptr.vmem [resolvable:$true] %s357_s29 }
  0x16   : > { %s321_s27 = sshll.u32 %s1876_s1, 4  ;;  %s1880_s3 = sld [smem:[#allocation20_spill]]  ;;  %s322_s27 = int_to_ptr.hbm [resolvable:$true] %s321_s27 }
  0x17   : > { %1182 = dma.hbm_to_vmem [thread:$0]  (!%p1662_p5), %s322_s27, 512, %s324_s30, [#allocation9], %s1540_s16, %s1540_s16, %s1541_s25  }
  0x18   : > { %s355_s15 = sshll.u32 %s1879_s5, 4  ;;  %s1881_s7 = sld [smem:[#allocation22_spill]]  ;;  %s356_s15 = int_to_ptr.hbm [resolvable:$true] %s355_s15 }
  0x19   : > { %1188 = dma.hbm_to_vmem [thread:$0]  (!%p1662_p5), %s356_s15, 512, %s358_s29, [#allocation12], %s1540_s16, %s1540_s16, %s1541_s25  }
  0x1a   : > { %s1543_s30 = smov [#allocation10]   ;;  %s1544_s1 = smov [#allocation13]  }
  0x1b   : > { %s340_s26 = sshll.u32 %s1543_s30, 4  ;;  %s374_s23 = sshll.u32 %s1544_s1, 4  ;;  %s341_s26 = int_to_ptr.vmem [resolvable:$true] %s340_s26  ;;  %s375_s23 = int_to_ptr.vmem [resolvable:$true] %s374_s23 }
  0x1c   : > { %s338_s10 = sshll.u32 %s1880_s3, 4  ;;  %s41_s15 = sadd.s32 1, %s1533_s21  ;;  %s339_s10 = int_to_ptr.hbm [resolvable:$true] %s338_s10 }
  0x1d   : > { %1185 = dma.hbm_to_vmem [thread:$0]  (!%p1662_p5), %s339_s10, 512, %s341_s26, [#allocation9], %s1540_s16, %s1540_s16, %s1541_s25  }
  0x1e   : > { %s372_s27 = sshll.u32 %s1881_s7, 4  ;;  %s1123_s29 = sadd.s32 4294967294, %s1537_s22   ;;  %s373_s27 = int_to_ptr.hbm [resolvable:$true] %s372_s27 }
  0x1f   : > { %1191 = dma.hbm_to_vmem [thread:$0]  (!%p1662_p5), %s373_s27, 512, %s375_s23, [#allocation12], %s1540_s16, %s1540_s16, %s1541_s25  }
  0x20   : > { %p43_p7 = scmp.ge.s32.totalorder %s41_s15, 2  ;;  %s48_s13 = sadd.s32 1, %s1525_s19 }
  0x21   : > { %p55_p8 = scmp.ne.s32.totalorder %s1525_s19, %s1521_s18  ;;  %p56_p9 = scmp.eq.s32.totalorder %s1537_s22, 0 }
  0x22   : > { %s1893_s15 = smov (%p43_p7, %s41_s15), 0  ;;  %p61_p10 = scmp.ne.s32.totalorder %s1521_s18, %s1517_s17 }
  0x23   : > { %s45_s10 = ssub.s32 %s1533_s21, %s1893_s15  ;;  %s1882_s14 = sadd.s32 4294967295, %s1537_s22  }
  0x24   : > { %p297_p11 = scmp.eq.s32.totalorder %s1882_s14, 1  ;;  %p46_p12 = scmp.eq.s32.totalorder %s45_s10, 0 }
  0x25   : > { %p1700_p13 = por %p1646_p1, %p61_p10  ;;  %p303_p2 = scmp.eq.s32.totalorder %s1123_s29, 1 }
  0x26   : > { %p1704_p0 = por %p297_p11, %p55_p8  ;;  %p57_p4 = por %p56_p9, %p55_p8 }
  0x27   : > { %s1709_s25 = scalar_select %p46_p12, %s1525_s19, %s48_s13  }
  0x28   : > { %p1711_p5 = por %p303_p2, %p61_p10  ;;  %s397_s30 = sand.u32 1, %s1525_s19  }
  0x29   : > { %s1131_s26 = sshll.u32 %s1533_s21, 3  ;;  %p1204_p7 = scmp.lt.s32.totalorder %s1537_s22, 2 }
  0x2a   : > { %s1130_s1 = sshll.u32 %s397_s30, 3  ;;  %s405_s14 = scalar_lea.hbm %s1857_s0, %s1131_s26 }
  0x2b   : > { %s407_s3 = sshll.u32 %s405_s14, 4  ;;  %s401_s5 = scalar_lea.vmem [#allocation5], %s1130_s1  ;;  %s408_s3 = int_to_ptr.hbm [resolvable:$true] %s407_s3 }
  0x2c   : > { %s409_s7 = sshll.u32 %s401_s5, 4  ;;  %p1193_p11 = pnand %p1204_p7, %p57_p4  ;;  %s410_s7 = int_to_ptr.vmem [resolvable:$true] %s409_s7 }
  0x2d   : > { %s398_s29 = scalar_lea.sflag [#allocation6], %s397_s30  ;;  %418 = sbr.rel (%p1654_p3) target bundleno = 1382 (0x566), region = 64 }
  0x2e   : > { %1195 = dma.hbm_to_vmem [thread:$0]  (!%p1193_p11), %s408_s3, 128, %s410_s7, %s398_s29  }
  0x2f   : > { %s1724_s13 = sand.u32 (!%p1654_p3), 1, %s1521_s18  }
  0x30   : > { %s1133_s23 = sshll.u32 (!%p1654_p3), %s1724_s13, 3  ;;  %s421_s26 = scalar_lea.sflag (!%p1654_p3), [#allocation6], %s1724_s13 }
  0x31   : > { %s424_s1 = scalar_lea.vmem (!%p1654_p3), [#allocation5], %s1133_s23 }
  0x32   : > { %1500 = dma.done.wait (%p1700_p13), %s421_s26, 128  }
  0x33   : > { %1502 = vsyncadd (%p1700_p13), %s421_s26, 4294967168 }
  0x34   : > { %1504 = dma.done.wait (%p1646_p1), [#allocation9], 1024  }
  0x35   : > { %1506 = vsyncadd (%p1646_p1), [#allocation9], 4294966272 }
  0x36   : > { %1508 = dma.done.wait (%p1646_p1), [#allocation12], 1024  }
  0x37   : > { %1510 = vsyncadd (%p1646_p1), [#allocation12], 4294966272  ;;  %v492_v0 = vld [vmem:[#allocation10 + $0x18] sm:$0xff]  ;;  %v491_v1 = vld [vmem:[#allocation10 + $0x10] sm:$0xff]  ;;  %vm497_vm0 = vcmask 261120   ;;  %vm587_vm1 = vcmask 64512  }
  0x38   : > { %v555_v2 = vld [vmem:[#allocation8 + $0x18] sm:$0xff]  ;;  %513 = vmatpush.msra.mxu0 %v492_v0  ;;  %v554_v3 = vld [vmem:[#allocation8 + $0x10] sm:$0xff]  ;;  %v490_v4 = vld [vmem:[#allocation10 + $0x8] sm:$0xff]  ;;  %s1545_s28 = smov 104   ;;  %s1546_s12 = smov 120  }
  0x39   : > { %576 = vmatpush.msra.mxu2 %v555_v2  ;;  %v489_v5 = vld [vmem:[#allocation10] sm:$0xff]  ;;  %v553_v6 = vld [vmem:[#allocation8 + $0x8] sm:$0xff]  ;;  %v1742_v8 = vld [vmem:[%s424_s1] sm:$0xff]  ;;  %s1547_s30 = smov 112   ;;  %s1548_s29 = smov 8  }
  0x3a   : > { %514 = vmatpush.msra.mxu0 %v491_v1  ;;  %v552_v7 = vld [vmem:[#allocation8] sm:$0xff]  ;;  %v1271_v9 = vld [vmem:[%s1861_s4] ss:$0 sm:$0xff]  ;;  %v524_v26 = vld [vmem:[#allocation11 + $0x10] sm:$0xff]  ;;  %s1549_s26 = smov 16   ;;  %s1550_s1 = smov 24  }
  0x3b   : > { %577 = vmatpush.msra.mxu2 %v554_v3  ;;  %v1272_v12 = vld [vmem:[%s1859_s2] ss:$0 sm:$0xff]  ;;  %v523_v27 = vld [vmem:[#allocation11 + $0x8] sm:$0xff]  ;;  %v522_v28 = vld [vmem:[#allocation11] sm:$0xff]  ;;  %s1156_s7 = sshll.u32 %s1529_s20, 3  ;;  %s483_s20 = scalar_lea.vmem [#allocation14], %s1133_s23 }
  0x3c   : > { %515 = vmatpush.msra.mxu0 %v490_v4  ;;  %v525_v25 = vld [vmem:[#allocation11 + $0x18] sm:$0xff]  ;;  %s1000_s10 = scalar_lea.hbm %s1868_s11, %s1156_s7  ;;  %s989_s5 = scalar_lea.sflag [#allocation7], %s1724_s13 }
  0x3d   : > { %578 = vmatpush.msra.mxu2 %v553_v6  ;;  %542 = vmatpush.msra.mxu1 %v525_v25  ;;  %v1273_v40 = vld [vmem:[%s1863_s6] ss:$0 sm:$0xff]  ;;  %s1004_s3 = sshll.u32 %s1000_s10, 4  ;;  %s1467_s23 = scalar_lea.hbm %s1868_s11, 16  ;;  %s1005_s3 = int_to_ptr.hbm [resolvable:$true] %s1004_s3 }
  0x3e   : > { %516 = vmatpush.msra.mxu0 %v489_v5  ;;  %s1461_s24 = sshra.s32 %s1005_s3, 4  ;;  %s1462_s24 = int_to_ptr.hbm [resolvable:$true] %s1461_s24 }
  0x3f   : > { %579 = vmatpush.msra.mxu2 %v552_v7  ;;  %1139 = vmatmul.msk.f32.vlgmr.msra.gmra.mxu0 %vm497_vm0, %v1742_v8  ;;  %s1463_s7 = scalar_lea.hbm %s1462_s24, 8  ;;  %p1468_p9 = scmp.lt.s32.totalorder %s1462_s24, %s1868_s11 }
  0x40   : > { %1141 = vmatmul.msk.f32.vlgmr.msra.gmra.mxu2 %vm497_vm0, %v1742_v8  ;;  %543 = vmatpush.msra.mxu1 %v524_v26  ;;  %p1464_p1 = scmp.ne.s32.totalorder %s1462_s24, %s1463_s7  ;;  %p1469_p10 = scmp.lt.s32.totalorder %s1467_s23, %s1463_s7 }
  0x42   : > { %544 = vmatpush.msra.mxu1 %v523_v27  ;;  %p1465_p3 = pnand %p1464_p1, %p1704_p0  ;;  %p1470_p12 = por %p1469_p10, %p1468_p9 }
  0x44   : > { %545 = vmatpush.msra.mxu1 %v522_v28  ;;  %p1466_p8 = pneg %p1465_p3 }
  0x45   : > { %1140 = vmatmul.msk.f32.vlgmr.msra.gmra.mxu1 %vm497_vm0, %v1742_v8 }
  0x46   : > { %p1471_p13 = pnand %p1470_p12, %p1466_p8 }
  0xbc   : > { %v518_v10 = vpop.f32.mrf.mxu0 }
  0xbd   : > { %v519_v11 = vadd.f32 %v1271_v9, %v518_v10 }
  0xbf   : > { %521 = vst.msk [vmem:[#allocation2] sm:$0xff] %vm497_vm0, %v519_v11 }
  0xc2   : > { %v547_v41 = vpop.f32.mrf.mxu1 }
  0xc3   : > { %v581_v13 = vpop.f32.mrf.mxu2  ;;  %v548_v42 = vadd.f32 %v1273_v40, %v547_v41 }
  0xc4   : > { %v582_v14 = vadd.f32 %v1272_v12, %v581_v13 }
  0xc5   : > { %550 = vst.msk [vmem:[#allocation3] sm:$0xff] %vm497_vm0, %v548_v42 }
  0xc6   : > { %v585_v15 = vld [vmem:[#allocation2] sm:$0xff]  ;;  %v584_v16 = vmul.f32 0.35355338, %v582_v14 }
  0xc7   : > { %833 = vrot.lane.b32.xlu2 %v585_v15, %s1545_s28  ;;  %664 = vrot.lane.b32.xlu1 %v585_v15, %s1546_s12 }
  0xc8   : > { %749 = vrot.lane.b32.xlu0 %v585_v15, %s1547_s30  ;;  %1142 = vmatpush.xpose.msk.msra.mxu3 %vm587_vm1, %v585_v15 }
  0xcb   : > { %1143 = vmatmul.msk.f32.vlgmr.msra.gmra.mxu3 %vm587_vm1, %v584_v16 }
  0xcc   : > { %v586_v45 = vld [vmem:[#allocation3] sm:$0xff] }
  0xcd   : > { %656 = vmatpush.msrb.mxu3 %v586_v45 }
  0xcf   : > { %831 = vrot.lane.b32.xlu2 %v584_v16, %s1545_s28  ;;  %662 = vrot.lane.b32.xlu1 %v584_v16, %s1546_s12 }
  0xd0   : > { %747 = vrot.lane.b32.xlu0 %v584_v16, %s1547_s30 }
 0x121   : > { %v834_v18 = vpop.permute.xlu2 %833 }
 0x129   : > { %v832_v22 = vpop.permute.xlu2 %831 }
 0x139   : > { %v665_v17 = vpop.permute.xlu1 %664 }
 0x13a   : > { %v750_v19 = vpop.permute.xlu0 %749  ;;  %1145 = vmatpush.xpose.msk.msrb.mxu0 %vm587_vm1, %v665_v17 }
 0x13b   : > { %1148 = vmatpush.xpose.msk.msrb.mxu2 %vm587_vm1, %v750_v19 }
 0x13e   : > { %1151 = vmatpush.xpose.msk.msra.mxu0 %vm587_vm1, %v834_v18 }
 0x141   : > { %v663_v20 = vpop.permute.xlu1 %662 }
 0x142   : > { %v748_v21 = vpop.permute.xlu0 %747  ;;  %1146 = vmatmul.msk.f32.vlgmr.msrb.gmra.mxu0 %vm587_vm1, %v663_v20 }
 0x143   : > { %1149 = vmatmul.msk.f32.vlgmr.msrb.gmra.mxu2 %vm587_vm1, %v748_v21 }
 0x14a   : > { %1152 = vmatmul.msk.f32.vlgmr.msra.gmra.mxu0 %vm587_vm1, %v832_v22 }
 0x14e   : > { %v611_v23 = vpop.f32.mrf.mxu3 }
 0x14f   : > { %v614_v24 = vsel %vm587_vm1, %v611_v23, -inf }
 0x150   : > { %615 = vmax.xlane.f32.xlu0 %v614_v24 }
 0x1bf   : > { %v687_v29 = vpop.f32.mrf.mxu0 }
 0x1c0   : > { %v690_v30 = vsel %vm587_vm1, %v687_v29, -inf }
 0x1c1   : > { %691 = vmax.xlane.f32.xlu1 %v690_v30 }
 0x1c3   : > { %v616_v31 = vpop.xlane.xlu0 %615 }
 0x1c4   : > { %v617_v32 = vsub.f32 %v611_v23, %v616_v31 }
 0x1c6   : > { %v618_v33 = vmul.f32 1.442695, %v617_v32  ;;  %v772_v34 = vpop.f32.mrf.mxu2 }
 0x1c7   : > { %v775_v35 = vsel %vm587_vm1, %v772_v34, -inf  ;;  %v856_v36 = vpop.f32.mrf.mxu0 }
 0x1c8   : > { %1277 = vpow2.f32 %v618_v33  ;;  %776 = vmax.xlane.f32.xlu2 %v775_v35  ;;  %v859_v38 = vsel %vm587_vm1, %v856_v36, -inf }
 0x1ce   : > { %v1278_v37 = vpop.eup %1277 }
 0x1cf   : > { %v620_v39 = vsel %vm587_vm1, %v1278_v37, 0.0 }
 0x1d0   : > { %860 = vmax.xlane.f32.xlu2 %v859_v38  ;;  %621 = vadd.xlane.f32.xlu0 %v620_v39 }
 0x234   : > { %v692_v43 = vpop.xlane.xlu1 %691 }
 0x235   : > { %v693_v44 = vsub.f32 %v687_v29, %v692_v43 }
 0x237   : > { %v694_v46 = vmul.f32 1.442695, %v693_v44 }
 0x239   : > { %1279 = vpow2.f32 %v694_v46 }
 0x23b   : > { %v777_v47 = vpop.xlane.xlu2 %776 }
 0x23c   : > { %v778_v48 = vsub.f32 %v772_v34, %v777_v47 }
 0x23e   : > { %v779_v49 = vmul.f32 1.442695, %v778_v48 }
 0x23f   : > { %v1780_v50 = vpop.eup %1279 }
 0x240   : > { %1281 = vpow2.f32 %v779_v49  ;;  %v696_v51 = vsel %vm587_vm1, %v1780_v50, 0.0 }
 0x241   : > { %697 = vadd.xlane.f32.xlu1 %v696_v51  ;;  %v919_v51 = vld [vmem:[#allocation13 + $0x18] sm:$0xff] }
 0x242   : > { %939 = vmatpush.msra.mxu2 %v919_v51 }
 0x243   : > { %v861_v52 = vpop.xlane.xlu2 %860  ;;  %v622_v53 = vpop.xlane.xlu0 %621 }
 0x244   : > { %v862_v54 = vsub.f32 %v856_v36, %v861_v52  ;;  %1283 = vrcp.f32 %v622_v53  ;;  %v634_v62 = vand.u32 2147483648, %v622_v53  ;;  %v632_v0 = vand.u32 2147483647, %v622_v53  ;;  %v918_v52 = vld [vmem:[#allocation13 + $0x10] sm:$0xff] }
 0x245   : > { %vm628_vm3 = vweird.f32 %v622_v53  ;;  %940 = vmatpush.msra.mxu2 %v918_v52 }
 0x246   : > { %v1784_v55 = vpop.eup %1281  ;;  %v863_v56 = vmul.f32 1.442695, %v862_v54  ;;  %v635_v3 = vor.u32 1.1754944e-38, %v634_v62  ;;  %vm633_vm5 = vcmp.eq.f32.partialorder %v632_v0, 8.507059e+37  ;;  %v916_v54 = vld [vmem:[#allocation13] sm:$0xff]  ;;  %v1551_v0 = vmov 32.0  }
 0x247   : > { %v781_v57 = vsel %vm587_vm1, %v1784_v55, 0.0 }
 0x248   : > { %1285 = vpow2.f32 %v863_v56  ;;  %782 = vadd.xlane.f32.xlu2 %v781_v57 }
 0x24a   : > { %v1284_v58 = vpop.eup %1283 }
 0x24b   : > { %v624_v59 = vmul.f32 %v1284_v58, %v622_v53  ;;  %vm629_vm2 = vweird.f32 %v1284_v58  ;;  %v917_v53 = vld [vmem:[#allocation13 + $0x8] sm:$0xff] }
 0x24c   : > { %vm630_vm4 = vmor %vm628_vm3, %vm629_vm2  ;;  %941 = vmatpush.msra.mxu2 %v917_v53 }
 0x24d   : > { %v625_v60 = vsub.f32 1.0, %v624_v59  ;;  %v1274_v59 = vld [vmem:[%s1865_s8] ss:$0 sm:$0xff] }
 0x24e   : > { %v1788_v61 = vpop.eup %1285  ;;  %942 = vmatpush.msra.mxu2 %v916_v54 }
 0x24f   : > { %v626_v63 = vmul.f32 %v1284_v58, %v625_v60  ;;  %v865_v1 = vsel %vm587_vm1, %v1788_v61, 0.0 }
 0x250   : > { %866 = vadd.xlane.f32.xlu0 %v865_v1 }
 0x251   : > { %v627_v2 = vadd.f32 %v1284_v58, %v626_v63 }
 0x253   : > { %v631_v4 = vsel %vm630_vm4, %v1284_v58, %v627_v2  ;;  %vm745_vm4 = vcmask 130112  }
 0x254   : > { %v636_v5 = vsel %vm633_vm5, %v635_v3, %v631_v4  ;;  %vm913_vm5 = vcmask 261312  }
 0x255   : > { %v637_v6 = vmul.f32 %v1278_v37, %v636_v5 }
 0x257   : > { %1144 = vmatmul.msk.f32.vlgmr.msrb.gmra.mxu3 %vm587_vm1, %v637_v6 }
 0x25a   : > { %715 = vrot.lane.b32.xlu1 %v586_v45, %s1546_s12 }
 0x260   : > { %799 = vrot.lane.b32.xlu2 %v586_v45, %s1547_s30 }
 0x264   : > { %883 = vrot.lane.b32.xlu0 %v586_v45, %s1545_s28 }
 0x2b4   : > { %v698_v7 = vpop.xlane.xlu1 %697 }
 0x2b5   : > { %1287 = vrcp.f32 %v698_v7  ;;  %v710_v16 = vand.u32 2147483648, %v698_v7  ;;  %vm704_vm7 = vweird.f32 %v698_v7  ;;  %v708_v20 = vand.u32 2147483647, %v698_v7 }
 0x2b7   : > { %v711_v24 = vor.u32 1.1754944e-38, %v710_v16  ;;  %vm709_vm10 = vcmp.eq.f32.partialorder %v708_v20, 8.507059e+37 }
 0x2bb   : > { %v1288_v9 = vpop.eup %1287  ;;  %v783_v10 = vpop.xlane.xlu2 %782 }
 0x2bc   : > { %v700_v11 = vmul.f32 %v1288_v9, %v698_v7  ;;  %1289 = vrcp.f32 %v783_v10  ;;  %vm705_vm6 = vweird.f32 %v1288_v9  ;;  %v795_v22 = vand.u32 2147483648, %v783_v10 }
 0x2bd   : > { %vm706_vm8 = vmor %vm704_vm7, %vm705_vm6  ;;  %v793_v26 = vand.u32 2147483647, %v783_v10  ;;  %vm789_vm11 = vweird.f32 %v783_v10 }
 0x2be   : > { %v701_v12 = vsub.f32 1.0, %v700_v11  ;;  %v796_v30 = vor.u32 1.1754944e-38, %v795_v22 }
 0x2bf   : > { %vm794_vm13 = vcmp.eq.f32.partialorder %v793_v26, 8.507059e+37 }
 0x2c0   : > { %v702_v13 = vmul.f32 %v1288_v9, %v701_v12 }
 0x2c2   : > { %v1290_v14 = vpop.eup %1289  ;;  %v703_v15 = vadd.f32 %v1288_v9, %v702_v13 }
 0x2c3   : > { %v785_v17 = vmul.f32 %v1290_v14, %v783_v10  ;;  %v800_v18 = vpop.permute.xlu2 %799  ;;  %v867_v19 = vpop.xlane.xlu0 %866  ;;  %vm790_vm9 = vweird.f32 %v1290_v14 }
 0x2c4   : > { %1291 = vrcp.f32 %v867_v19  ;;  %820 = vmatpush.msra.mxu3 %v800_v18  ;;  %v707_v23 = vsel %vm706_vm8, %v1288_v9, %v703_v15  ;;  %vm791_vm12 = vmor %vm789_vm11, %vm790_vm9  ;;  %v879_v38 = vand.u32 2147483648, %v867_v19  ;;  %v877_v40 = vand.u32 2147483647, %v867_v19 }
 0x2c5   : > { %v786_v21 = vsub.f32 1.0, %v785_v17  ;;  %v712_v28 = vsel %vm709_vm10, %v711_v24, %v707_v23  ;;  %vm873_vm15 = vweird.f32 %v867_v19  ;;  %1293 = vrcp.f32 %v1551_v0 }
 0x2c6   : > { %v713_v35 = vmul.f32 %v1780_v50, %v712_v28  ;;  %v880_v42 = vor.u32 1.1754944e-38, %v879_v38  ;;  %vm878_vm3 = vcmp.eq.f32.partialorder %v877_v40, 8.507059e+37 }
 0x2c7   : > { %v787_v25 = vmul.f32 %v1290_v14, %v786_v21  ;;  %v1275_v21 = vld [vmem:[%s1866_s9] ss:$0 sm:$0xff] }
 0x2c9   : > { %v788_v27 = vadd.f32 %v1290_v14, %v787_v25 }
 0x2ca   : > { %v1292_v29 = vpop.eup %1291 }
 0x2cb   : > { %v792_v31 = vsel %vm791_vm12, %v1290_v14, %v788_v27  ;;  %v869_v32 = vmul.f32 %v1292_v29, %v867_v19  ;;  %vm874_vm14 = vweird.f32 %v1292_v29  ;;  %v1294_v1 = vpop.eup %1293 }
 0x2cc   : > { %v797_v33 = vsel %vm794_vm13, %v796_v30, %v792_v31  ;;  %v716_v34 = vpop.permute.xlu1 %715  ;;  %vm875_vm2 = vmor %vm873_vm15, %vm874_vm14  ;;  %v952_v2 = vmul.f32 32.0, %v1294_v1  ;;  %vm956_vm6 = vweird.f32 %v1294_v1 }
 0x2cd   : > { %v870_v36 = vsub.f32 1.0, %v869_v32  ;;  %736 = vmatpush.msrb.mxu1 %v716_v34  ;;  %v798_v37 = vmul.f32 %v1784_v55, %v797_v33 }
 0x2ce   : > { %1147 = vmatmul.msk.f32.vlgmr.msrb.gmra.mxu1 %vm587_vm1, %v713_v35  ;;  %v953_v3 = vsub.f32 1.0, %v952_v2 }
 0x2cf   : > { %v871_v39 = vmul.f32 %v1292_v29, %v870_v36  ;;  %1150 = vmatmul.msk.f32.vlgmr.msra.gmra.mxu3 %vm587_vm1, %v798_v37 }
 0x2d0   : > { %v954_v4 = vmul.f32 %v1294_v1, %v953_v3 }
 0x2d1   : > { %v872_v41 = vadd.f32 %v1292_v29, %v871_v39 }
 0x2d2   : > { %v955_v5 = vadd.f32 %v1294_v1, %v954_v4 }
 0x2d3   : > { %v876_v43 = vsel %vm875_vm2, %v1292_v29, %v872_v41 }
 0x2d4   : > { %v881_v44 = vsel %vm878_vm3, %v880_v42, %v876_v43  ;;  %v957_v6 = vsel %vm956_vm6, %v1294_v1, %v955_v5 }
 0x2d5   : > { %v882_v45 = vmul.f32 %v1788_v61, %v881_v44 }
 0x2d6   : > { %v884_v46 = vpop.permute.xlu0 %883 }
 0x2d7   : > { %904 = vmatpush.msra.mxu1 %v884_v46 }
 0x2d8   : > { %1153 = vmatmul.msk.f32.vlgmr.msra.gmra.mxu1 %vm587_vm1, %v882_v45 }
 0x2da   : > { %v658_v47 = vpop.f32.mrf.mxu3 }
 0x2db   : > { %661 = vst.msk [vmem:[#allocation4] sm:$0xff] %vm587_vm1, %v658_v47  ;;  %vm829_vm1 = vcmask 195712  }
 0x34b   : > { %v738_v48 = vpop.f32.mrf.mxu1 }
 0x34c   : > { %742 = vrot.lane.b32.xlu1 %v738_v48, %s1548_s29 }
 0x352   : > { %v822_v49 = vpop.f32.mrf.mxu3 }
 0x353   : > { %826 = vrot.lane.b32.xlu0 %v822_v49, %s1549_s26  ;;  %s1886_s26 = sld [smem:[#allocation23_spill]] }
 0x355   : > { %v906_v50 = vpop.f32.mrf.mxu1 }
 0x356   : > { %910 = vrot.lane.b32.xlu2 %v906_v50, %s1550_s1  ;;  %s1002_s1 = sshll.u32 %s483_s20, 4  ;;  %s1003_s1 = int_to_ptr.vmem [resolvable:$true] %s1002_s1 }
 0x359   : > { %v1276_v24 = vld [vmem:[%s1886_s26] ss:$0 sm:$0xff] }
 0x3b0   : > { %v911_v57 = vpop.permute.xlu2 %910 }
 0x3be   : > { %v743_v55 = vpop.permute.xlu1 %742 }
 0x3bf   : > { %746 = vst.msk [vmem:[#allocation4] sm:$0xff] %vm745_vm4, %v743_v55 }
 0x3c5   : > { %v827_v56 = vpop.permute.xlu0 %826 }
 0x3c6   : > { %830 = vst.msk [vmem:[#allocation4] sm:$0xff] %vm829_vm1, %v827_v56 }
 0x3c7   : > { %914 = vst.msk [vmem:[#allocation4] sm:$0xff] %vm913_vm5, %v911_v57 }
 0x3ce   : > { %v915_v58 = vld [vmem:[#allocation4] sm:$0xff] }
 0x3cf   : > { %1154 = vmatmul.msk.f32.vlgmr.msra.gmra.mxu2 %vm497_vm0, %v915_v58 }
 0x452   : > { %v944_v60 = vpop.f32.mrf.mxu2 }
 0x453   : > { %v945_v61 = vadd.f32 %v1274_v59, %v944_v60 }
 0x455   : > { %v947_v62 = vadd.f32 %v945_v61, %v1742_v8 }
 0x457   : > { %v948_v63 = vsel %vm497_vm0, %v947_v62, 0.0 }
 0x458   : > { %949 = vadd.xlane.f32.xlu1 %v948_v63 }
 0x4cb   : > { %v950_v7 = vpop.xlane.xlu1 %949 }
 0x4cc   : > { %v958_v9 = vmul.f32 %v957_v6, %v950_v7 }
 0x4ce   : > { %v959_v10 = vsub.f32 %v947_v62, %v958_v9 }
 0x4d0   : > { %v960_v11 = vmul.f32 %v959_v10, %v959_v10 }
 0x4d2   : > { %v961_v12 = vsel %vm497_vm0, %v960_v11, 0.0 }
 0x4d3   : > { %962 = vadd.xlane.f32.xlu0 %v961_v12 }
 0x546   : > { %v963_v8 = vpop.xlane.xlu0 %962 }
 0x547   : > { %v964_v13 = vmul.f32 %v963_v8, %v957_v6 }
 0x549   : > { %v965_v14 = vadd.f32 1e-05, %v964_v13 }
 0x54b   : > { %1295 = vrsqrt.f32 %v965_v14  ;;  %vm972_vm8 = vweird.f32 %v965_v14 }
 0x551   : > { %v1296_v15 = vpop.eup %1295 }
 0x552   : > { %v967_v16 = vmul.f32 %v1296_v15, %v965_v14  ;;  %vm973_vm7 = vweird.f32 %v1296_v15 }
 0x553   : > { %vm974_vm9 = vmor %vm972_vm8, %vm973_vm7 }
 0x554   : > { %v968_v17 = vmul.f32 %v1296_v15, %v967_v16 }
 0x556   : > { %v969_v18 = vmul.f32 0.5, %v968_v17 }
 0x558   : > { %v970_v19 = vsub.f32 1.5, %v969_v18 }
 0x55a   : > { %v971_v20 = vmul.f32 %v1296_v15, %v970_v19 }
 0x55c   : > { %v975_v22 = vsel %vm974_vm9, %v1296_v15, %v971_v20 }
 0x55d   : > { %v976_v23 = vmul.f32 %v975_v22, %v959_v10 }
 0x55f   : > { %v981_v25 = vmul.f32 %v1275_v21, %v976_v23 }
 0x561   : > { %v986_v26 = vadd.f32 %v1276_v24, %v981_v25 }
 0x563   : > { %987 = vst.msk [vmem:[%s483_s20] sm:$0xff] %vm497_vm0, %v986_v26 }
 0x564   : > { %1474 = shalt.err (!%p1471_p13)
}
 0x565   : > { %1177 = dma.vmem_to_hbm [thread:$0]  (%p1704_p0), %s1003_s1, 128, %s1005_s3, %s989_s5  }
 0x566 PF: > { %s1016_s13 = sand.u32 1, %s1517_s17   ;;  %p1197_p2 = pnand %p1129_p6, %p1711_p5 }
 0x567   : > { %s1017_s14 = scalar_lea.sflag [#allocation7], %s1016_s13 }
 0x568   : > { %p1198_p4 = pneg %p1197_p2 }
 0x56a   : > { %1512 = dma.done.wait (%p1198_p4), %s1017_s14, 128  }
 0x56b   : > { %1514 = vsyncadd (%p1198_p4), %s1017_s14, 4294967168  ;;  %s29_s22 = sadd.s32 1, %s1537_s22   ;;  %s1887_s17 = smov %s1521_s18 }
 0x56c   : > { %p26_p7 = scmp.ge.s32.totalorder %s29_s22, 4   ;;  %s1888_s18 = smov %s1525_s19 }
 0x56d   : > { %s1889_s19 = smov %s1709_s25  ;;  %s1890_s20 = smov %s1533_s21 }
 0x56e   : > { %s1891_s21 = smov %s1893_s15  ;;  %28 = sbr.rel (!%p26_p7) target bundleno = 14 (0xe), region = 129 }
 0x573   :  { %1023 = vsyncpa [#allocation6], 1 }
 0x574   :  { %1025 = vsyncpa [#allocation6 + $0x1], 1 }
 0x575   :  { %1026 = vsyncpa [#allocation9], 1 }
 0x576   :  { %1027 = vsyncpa [#allocation12], 1 }
 0x577   :  { %1028 = vsyncpa [#allocation7], 1 }
 0x578   :  { %1030 = vsyncpa [#allocation7 + $0x1], 1 }

</bundles_post_ra>
